<compile_context>
chip_gen: v6e
topology: v6e:2x2x1
jax: 0.10.0
libtpu: 0.0.40
codegen_flags: <defaults>
</compile_context>

<pallas_src>
import functools

import jax
import jax.numpy as jnp
from jax.experimental import pallas as pl
from jax.experimental.pallas import tpu as pltpu


# ---------------------------------------------------------------------------
# Kernel
# ---------------------------------------------------------------------------
def highway_kernel(x_ref, w_ref, b_ref, o_ref, *, n_layers, size):
    """Run one (C, TILE_L) activation tile through the whole highway stack.

    x_ref : (C, TILE_L)   input tile (channels x positions)
    w_ref : (n, 2C, C)    fused [linear; gate] weights (f32 or bf16)
    b_ref : (n, 2C, 1)    fused [linear; gate] biases (f32)
    o_ref : (C, TILE_L)   output tile
    """
    x = x_ref[...].astype(jnp.float32)          # residual / blend path kept in f32
    mm_dtype = w_ref.dtype                      # f32, or bf16 on the v6e/v7x fast path
    for i in range(n_layers):                   # n_layers is small & static -> unrolled
        # Skip the pack cast entirely on the f32 (v5e-friendly) path.
        lhs = x if mm_dtype == jnp.float32 else x.astype(mm_dtype)
        y = jnp.dot(w_ref[i], lhs,
                    preferred_element_type=jnp.float32) + b_ref[i]   # (2C, TILE_L)
        nonlinear = y[:size, :]
        gate = jax.nn.sigmoid(y[size:, :])
        # TODO(synk): F.dropout(p=0.1) is identity in eval mode; training-mode dropout
        # (pltpu.prng_random_bits mask on `nonlinear`) is not implemented here.
        # 3-op blend:  gate*nonlinear + (1-gate)*x  ==  x + gate*(nonlinear - x)
        x = x + gate * (nonlinear - x)
    o_ref[...] = x.astype(o_ref.dtype)


# ---------------------------------------------------------------------------
# Tiling / VMEM heuristics
# ---------------------------------------------------------------------------
def _choose_tiling(N, L, max_tile=2048, min_steps=4):
    """Pick (padded_L, tile_l).

    Lane tiles are multiples of 128, as large as possible (<= max_tile),
    preferring zero padding waste, then multiples of 512/256 (full 256-wide MXU
    result passes on v6e/v7x), while keeping at least `min_steps` total grid
    steps so each v7x TensorCore gets >= 2 pipelined steps.
    """
    lp128 = ((max(L, 1) + 127) // 128) * 128
    candidates = []
    t = 128
    while t <= min(max_tile, lp128):
        lp = ((L + t - 1) // t) * t
        steps = N * (lp // t)
        waste = lp - L
        candidates.append((t, lp, steps, waste))
        t += 128
    if not candidates:
        return lp128, lp128
    viable = [c for c in candidates if c[2] >= min_steps]
    pool = viable if viable else candidates

    def key(c):
        t, lp, steps, waste = c
        return (waste > 0, waste, t % 512 != 0, t % 256 != 0, -t)

    t, lp, _, _ = min(pool, key=key)
    return lp, t


def _vmem_limit_bytes(C, tile_l, n_layers, two_c, x_dtype, w_dtype):
    """Explicit scoped-VMEM budget from the actual block footprint (per-chip
    defaults differ: v5e 16 MiB, v6e/v7x 32 MiB of 128/64 MiB physical)."""
    lane = lambda d: max(128, ((d + 127) // 128) * 128)
    x_it = jnp.dtype(x_dtype).itemsize
    w_it = jnp.dtype(w_dtype).itemsize
    io = 4 * C * tile_l * x_it                       # double-buffered in + out tiles
    wgt = n_layers * two_c * lane(C) * w_it          # grid-resident fused weights
    bias = n_layers * two_c * lane(1) * 4            # lane-padded f32 biases
    scratch = (two_c + 2 * C) * tile_l * 4 * 2       # per-layer y + f32 x copies (headroom)
    total = int(1.5 * (io + 2 * wgt + 2 * bias + scratch)) + (4 << 20)
    return max(16 << 20, min(64 << 20, total))       # stay within v7x physical VMEM


# ---------------------------------------------------------------------------
# Wrapper
# ---------------------------------------------------------------------------
def _build_call(N, C, Lp, L_out, n, two_c, tile_l, x_dtype, w_dtype,
                single_buffer_weights):
    size = two_c // 2
    kernel = functools.partial(highway_kernel, n_layers=n, size=size)
    grid = (N, Lp // tile_l)

    if single_buffer_weights:
        # Grid-invariant operands: constant index_map + single buffer (no need to
        # double-buffer something that is fetched exactly once).
        w_spec = pl.BlockSpec((n, two_c, C), lambda b, l: (0, 0, 0),
                              pipeline_mode=pl.Buffered(1))
        b_spec = pl.BlockSpec((n, two_c, 1), lambda b, l: (0, 0, 0),
                              pipeline_mode=pl.Buffered(1))
    else:
        w_spec = pl.BlockSpec((n, two_c, C), lambda b, l: (0, 0, 0))
        b_spec = pl.BlockSpec((n, two_c, 1), lambda b, l: (0, 0, 0))

    w_it = jnp.dtype(w_dtype).itemsize
    x_it = jnp.dtype(x_dtype).itemsize
    cost = pl.CostEstimate(
        flops=n * N * Lp * (2 * two_c * C + 4 * C),
        transcendentals=n * N * Lp * C,
        bytes_accessed=2 * N * C * Lp * x_it + n * two_c * C * w_it + n * two_c * 4,
    )

    return pl.pallas_call(
        kernel,
        out_shape=jax.ShapeDtypeStruct((N, C, Lp), x_dtype),
        grid_spec=pltpu.PrefetchScalarGridSpec(
            num_scalar_prefetch=0,
            grid=grid,
            in_specs=[
                # Activation tile: batch dim squeezed, full C on sublanes,
                # TILE_L positions on lanes (lane-dense, unmasked stores).
                pl.BlockSpec((None, C, tile_l), lambda b, l: (b, 0, l)),
                w_spec,
                b_spec,
            ],
            out_specs=pl.BlockSpec((None, C, tile_l), lambda b, l: (b, 0, l)),
        ),
        compiler_params=pltpu.CompilerParams(
            dimension_semantics=("parallel", "parallel"),
            vmem_limit_bytes=_vmem_limit_bytes(C, tile_l, n, two_c, x_dtype, w_dtype)),
        cost_estimate=cost,
    )


def highway_forward(x_ncl, w_fused, b_fused):
    """x_ncl: (N, C, L).  w_fused: (n, 2C, C).  b_fused: (n, 2C, 1) float32."""
    N, C, L = x_ncl.shape
    n, two_c, _ = w_fused.shape
    assert two_c == 2 * C, "fused weight channel count must match input channels"

    Lp, tile_l = _choose_tiling(N, L)
    x_in = x_ncl if Lp == L else jnp.pad(x_ncl, ((0, 0), (0, 0), (0, Lp - L)))

    try:
        fn = _build_call(N, C, Lp, L, n, two_c, tile_l, x_ncl.dtype,
                         w_fused.dtype, single_buffer_weights=True)
        out = fn(x_in, w_fused, b_fused)
    except Exception:
        # Fallback for JAX versions without pipeline_mode=pl.Buffered(1).
        fn = _build_call(N, C, Lp, L, n, two_c, tile_l, x_ncl.dtype,
                         w_fused.dtype, single_buffer_weights=False)
        out = fn(x_in, w_fused, b_fused)

    return out if Lp == L else out[..., :L]


# ---------------------------------------------------------------------------
# Parameter init / fusion / reference
# ---------------------------------------------------------------------------
def init_params(key, n_layers, size):
    """Deterministic init matching the PyTorch module's shapes.

    linear/gate weights: Conv1d(size, size, k=1) -> (size, size, 1), squeezed to
    (size, size); relu=False -> xavier_normal.  bias: Conv1d default
    uniform(-1/sqrt(fan_in), 1/sqrt(fan_in)).
    """
    keys = jax.random.split(key, 4)
    xavier_std = (2.0 / (size + size)) ** 0.5
    bias_bound = 1.0 / (size ** 0.5)
    w_lin = xavier_std * jax.random.normal(keys[0], (n_layers, size, size), jnp.float32)
    w_gate = xavier_std * jax.random.normal(keys[1], (n_layers, size, size), jnp.float32)
    b_lin = jax.random.uniform(keys[2], (n_layers, size), jnp.float32,
                               -bias_bound, bias_bound)
    b_gate = jax.random.uniform(keys[3], (n_layers, size), jnp.float32,
                                -bias_bound, bias_bound)
    return w_lin, b_lin, w_gate, b_gate


def fuse_params(w_lin, b_lin, w_gate, b_gate, matmul_dtype=jnp.float32):
    """One-time parameter prep (kept OUT of the per-call path):
    concat [linear; gate] along the output-channel axis so the kernel issues a
    single (2C, C) @ (C, TILE_L) matmul per layer.  Weights may be cast to bf16
    for the v6e/v7x MXU fast path; biases stay f32 (added to the f32 accumulator).
    On v5e prefer matmul_dtype=f32 (bf16 buys nothing at C=64 and adds cast work).
    """
    # TODO(synk): if n_layers*C grows, repack so the weight's last (lane) dim is a
    # multiple of 128 (e.g. (2C, n*C) layout or pad C->128) to avoid lane-padded
    # VMEM/DMA waste; irrelevant at n=2, C=64.
    w_fused = jnp.concatenate([w_lin, w_gate], axis=1).astype(matmul_dtype)   # (n, 2C, C)
    b_fused = jnp.concatenate([b_lin, b_gate], axis=1)[:, :, None].astype(jnp.float32)  # (n, 2C, 1)
    return w_fused, b_fused


def highway_reference(x_ncl, w_lin, b_lin, w_gate, b_gate):
    """Pure-JAX reference for verification (eval mode, dropout = identity)."""
    x = x_ncl
    n = w_lin.shape[0]
    for i in range(n):
        lin = jnp.einsum("oc,ncl->nol", w_lin[i], x) + b_lin[i][None, :, None]
        gate = jax.nn.sigmoid(
            jnp.einsum("oc,ncl->nol", w_gate[i], x) + b_gate[i][None, :, None])
        x = gate * lin + (1.0 - gate) * x
    return x


if __name__ == "__main__":
    key = jax.random.PRNGKey(0)
    k_x, k_p = jax.random.split(key)

    # Shapes consistent with the module: Highway(layer_num=2, size=64),
    # input (batch=2, channels=64, seq_len=256) in NCL.
    N, C, L = 2, 64, 256
    n_layers = 2

    x = jax.random.normal(k_x, (N, C, L), jnp.float32)
    w_lin, b_lin, w_gate, b_gate = init_params(k_p, n_layers, C)
    ref = highway_reference(x, w_lin, b_lin, w_gate, b_gate)

    # f32 matmul path: exact match against the reference.
    w_f32, b_f32 = fuse_params(w_lin, b_lin, w_gate, b_gate, jnp.float32)
    out = jax.block_until_ready(highway_forward(x, w_f32, b_f32))
    assert out.shape == (N, C, L)
    assert jnp.allclose(out, ref, atol=1e-5, rtol=1e-5), "f32 mismatch vs reference"

    # bf16 matmul / f32 accumulate path (v6e/v7x MXU fast path): looser tolerance.
    w_bf16, b_bf16 = fuse_params(w_lin, b_lin, w_gate, b_gate, jnp.bfloat16)
    out_bf16 = jax.block_until_ready(highway_forward(x, w_bf16, b_bf16))
    assert out_bf16.shape == (N, C, L)
    assert jnp.allclose(out_bf16, ref, atol=3e-2, rtol=3e-2), "bf16 mismatch vs reference"

    # Non-128-multiple sequence length: exercises the pad-L / slice-back path.
    L_odd = 200
    x_odd = jax.random.normal(jax.random.PRNGKey(1), (N, C, L_odd), jnp.float32)
    ref_odd = highway_reference(x_odd, w_lin, b_lin, w_gate, b_gate)
    out_odd = jax.block_until_ready(highway_forward(x_odd, w_f32, b_f32))
    assert out_odd.shape == (N, C, L_odd)
    assert jnp.allclose(out_odd, ref_odd, atol=1e-5, rtol=1e-5), "padded-L mismatch"

    print("KERNEL_OK")
</pallas_src>

<mosaic_0001>
module attributes {stable_mosaic.version = 11 : i64} {
  func.func @highway_kernel(%arg0: i32, %arg1: i32, %arg2: memref<1x64x128xf32, #tpu.memory_space<vmem>>, %arg3: memref<2x128x64xf32, #tpu.memory_space<vmem>>, %arg4: memref<2x128x1xf32, #tpu.memory_space<vmem>>, %arg5: memref<1x64x128xf32, #tpu.memory_space<vmem>>) attributes {dimension_semantics = [#tpu.dimension_semantics<parallel>, #tpu.dimension_semantics<parallel>], iteration_bounds = array<i64: 2, 2>, scalar_prefetch = 0 : i64, scratch_operands = 0 : i64, tpu.core_type = #tpu.core_type<tc>, window_params = [{transform_indices = @transform_0, window_bounds = array<i64: 1, 64, 128>}, {pipeline_mode = #tpu.pipeline_mode<synchronous>, transform_indices = @transform_1, window_bounds = array<i64: 2, 128, 64>}, {pipeline_mode = #tpu.pipeline_mode<synchronous>, transform_indices = @transform_2, window_bounds = array<i64: 2, 128, 1>}, {transform_indices = @transform_3, window_bounds = array<i64: 1, 64, 128>}]} {
    %c0 = arith.constant 0 : index
    %c0_0 = arith.constant 0 : index
    %c0_1 = arith.constant 0 : index
    %0 = vector.load %arg2[%c0, %c0_0, %c0_1] : memref<1x64x128xf32, #tpu.memory_space<vmem>>, vector<1x64x128xf32>
    %1 = vector.shape_cast %0 : vector<1x64x128xf32> to vector<64x128xf32>
    %c0_2 = arith.constant 0 : index
    %c0_3 = arith.constant 0 : index
    %c0_4 = arith.constant 0 : index
    %2 = vector.load %arg3[%c0_2, %c0_3, %c0_4] : memref<2x128x64xf32, #tpu.memory_space<vmem>>, vector<1x128x64xf32>
    %3 = vector.shape_cast %2 : vector<1x128x64xf32> to vector<128x64xf32>
    %cst = arith.constant dense<0.000000e+00> : vector<128x128xf32>
    %4 = tpu.matmul %3, %1, %cst {dimension_numbers = #tpu.dot_dimension_numbers<[1], [0], [0], [1], [0, 0, 1, 1], [], []>} : vector<128x64xf32>, vector<64x128xf32>, vector<128x128xf32> -> vector<128x128xf32>
    %c0_5 = arith.constant 0 : index
    %c0_6 = arith.constant 0 : index
    %c0_7 = arith.constant 0 : index
    %5 = vector.load %arg4[%c0_5, %c0_6, %c0_7] : memref<2x128x1xf32, #tpu.memory_space<vmem>>, vector<1x128x1xf32>
    %6 = vector.shape_cast %5 : vector<1x128x1xf32> to vector<128x1xf32>
    %7 = vector.broadcast %6 : vector<128x1xf32> to vector<128x128xf32>
    %8 = arith.addf %4, %7 : vector<128x128xf32>
    %9 = vector.extract_strided_slice %8 {offsets = [0, 0], sizes = [64, 128], strides = [1, 1]} : vector<128x128xf32> to vector<64x128xf32>
    %10 = vector.extract_strided_slice %8 {offsets = [64, 0], sizes = [64, 128], strides = [1, 1]} : vector<128x128xf32> to vector<64x128xf32>
    %11 = arith.negf %10 : vector<64x128xf32>
    %12 = math.exp %11 : vector<64x128xf32>
    %cst_8 = arith.constant 1.000000e+00 : f32
    %13 = vector.broadcast %cst_8 : f32 to vector<64x128xf32>
    %14 = arith.addf %13, %12 : vector<64x128xf32>
    %15 = arith.divf %13, %14 : vector<64x128xf32>
    %16 = arith.subf %9, %1 : vector<64x128xf32>
    %17 = arith.mulf %15, %16 : vector<64x128xf32>
    %18 = arith.addf %1, %17 : vector<64x128xf32>
    %c1 = arith.constant 1 : index
    %c0_9 = arith.constant 0 : index
    %c0_10 = arith.constant 0 : index
    %19 = vector.load %arg3[%c1, %c0_9, %c0_10] : memref<2x128x64xf32, #tpu.memory_space<vmem>>, vector<1x128x64xf32>
    %20 = vector.shape_cast %19 : vector<1x128x64xf32> to vector<128x64xf32>
    %cst_11 = arith.constant dense<0.000000e+00> : vector<128x128xf32>
    %21 = tpu.matmul %20, %18, %cst_11 {dimension_numbers = #tpu.dot_dimension_numbers<[1], [0], [0], [1], [0, 0, 1, 1], [], []>} : vector<128x64xf32>, vector<64x128xf32>, vector<128x128xf32> -> vector<128x128xf32>
    %c1_12 = arith.constant 1 : index
    %c0_13 = arith.constant 0 : index
    %c0_14 = arith.constant 0 : index
    %22 = vector.load %arg4[%c1_12, %c0_13, %c0_14] : memref<2x128x1xf32, #tpu.memory_space<vmem>>, vector<1x128x1xf32>
    %23 = vector.shape_cast %22 : vector<1x128x1xf32> to vector<128x1xf32>
    %24 = vector.broadcast %23 : vector<128x1xf32> to vector<128x128xf32>
    %25 = arith.addf %21, %24 : vector<128x128xf32>
    %26 = vector.extract_strided_slice %25 {offsets = [0, 0], sizes = [64, 128], strides = [1, 1]} : vector<128x128xf32> to vector<64x128xf32>
    %27 = vector.extract_strided_slice %25 {offsets = [64, 0], sizes = [64, 128], strides = [1, 1]} : vector<128x128xf32> to vector<64x128xf32>
    %28 = arith.negf %27 : vector<64x128xf32>
    %29 = math.exp %28 : vector<64x128xf32>
    %cst_15 = arith.constant 1.000000e+00 : f32
    %30 = vector.broadcast %cst_15 : f32 to vector<64x128xf32>
    %31 = arith.addf %30, %29 : vector<64x128xf32>
    %32 = arith.divf %30, %31 : vector<64x128xf32>
    %33 = arith.subf %26, %18 : vector<64x128xf32>
    %34 = arith.mulf %32, %33 : vector<64x128xf32>
    %35 = arith.addf %18, %34 : vector<64x128xf32>
    %c0_16 = arith.constant 0 : index
    %c0_17 = arith.constant 0 : index
    %c0_18 = arith.constant 0 : index
    %36 = vector.load %arg5[%c0_16, %c0_17, %c0_18] : memref<1x64x128xf32, #tpu.memory_space<vmem>>, vector<1x64x128xf32>
    %37 = vector.shape_cast %36 : vector<1x64x128xf32> to vector<64x128xf32>
    %38 = vector.shape_cast %35 : vector<64x128xf32> to vector<1x64x128xf32>
    tpu.vector_store %arg5[%c0_16, %c0_17, %c0_18], %38 {strides = array<i32>} : memref<1x64x128xf32, #tpu.memory_space<vmem>>, vector<1x64x128xf32>,
    return
  }
  func.func @transform_0(%arg0: i32, %arg1: i32) -> (i32, i32, i32) {
    %c0_i32 = arith.constant 0 : i32
    %c0_i32_0 = arith.constant 0 : i32
    return %arg0, %c0_i32, %arg1 : i32, i32, i32
  }
  func.func @transform_1(%arg0: i32, %arg1: i32) -> (i32, i32, i32) {
    %c0_i32 = arith.constant 0 : i32
    %c0_i32_0 = arith.constant 0 : i32
    %c0_i32_1 = arith.constant 0 : i32
    %c0_i32_2 = arith.constant 0 : i32
    return %c0_i32, %c0_i32_0, %c0_i32_1 : i32, i32, i32
  }
  func.func @transform_2(%arg0: i32, %arg1: i32) -> (i32, i32, i32) {
    %c0_i32 = arith.constant 0 : i32
    %c0_i32_0 = arith.constant 0 : i32
    %c0_i32_1 = arith.constant 0 : i32
    %c0_i32_2 = arith.constant 0 : i32
    return %c0_i32, %c0_i32_0, %c0_i32_1 : i32, i32, i32
  }
  func.func @transform_3(%arg0: i32, %arg1: i32) -> (i32, i32, i32) {
    %c0_i32 = arith.constant 0 : i32
    %c0_i32_0 = arith.constant 0 : i32
    return %arg0, %c0_i32, %arg1 : i32, i32, i32
  }
}

module attributes {stable_mosaic.version = 11 : i64} {
  func.func @highway_kernel(%arg0: i32, %arg1: i32, %arg2: memref<1x64x128xf32, #tpu.memory_space<vmem>>, %arg3: memref<2x128x64xf32, #tpu.memory_space<vmem>>, %arg4: memref<2x128x1xf32, #tpu.memory_space<vmem>>, %arg5: memref<1x64x128xf32, #tpu.memory_space<vmem>>) attributes {dimension_semantics = [#tpu.dimension_semantics<parallel>, #tpu.dimension_semantics<parallel>], iteration_bounds = array<i64: 2, 2>, scalar_prefetch = 0 : i64, scratch_operands = 0 : i64, tpu.core_type = #tpu.core_type<tc>, window_params = [{transform_indices = @transform_0, window_bounds = array<i64: 1, 64, 128>}, {pipeline_mode = #tpu.pipeline_mode<synchronous>, transform_indices = @transform_1, window_bounds = array<i64: 2, 128, 64>}, {pipeline_mode = #tpu.pipeline_mode<synchronous>, transform_indices = @transform_2, window_bounds = array<i64: 2, 128, 1>}, {transform_indices = @transform_3, window_bounds = array<i64: 1, 64, 128>}]} {
    %c0 = arith.constant 0 : index
    %c0_0 = arith.constant 0 : index
    %c0_1 = arith.constant 0 : index
    %0 = vector.load %arg2[%c0, %c0_0, %c0_1] : memref<1x64x128xf32, #tpu.memory_space<vmem>>, vector<1x64x128xf32>
    %1 = vector.shape_cast %0 : vector<1x64x128xf32> to vector<64x128xf32>
    %c0_2 = arith.constant 0 : index
    %c0_3 = arith.constant 0 : index
    %c0_4 = arith.constant 0 : index
    %2 = vector.load %arg3[%c0_2, %c0_3, %c0_4] : memref<2x128x64xf32, #tpu.memory_space<vmem>>, vector<1x128x64xf32>
    %3 = vector.shape_cast %2 : vector<1x128x64xf32> to vector<128x64xf32>
    %cst = arith.constant dense<0.000000e+00> : vector<128x128xf32>
    %4 = tpu.matmul %3, %1, %cst {dimension_numbers = #tpu.dot_dimension_numbers<[1], [0], [0], [1], [0, 0, 1, 1], [], []>} : vector<128x64xf32>, vector<64x128xf32>, vector<128x128xf32> -> vector<128x128xf32>
    %c0_5 = arith.constant 0 : index
    %c0_6 = arith.constant 0 : index
    %c0_7 = arith.constant 0 : index
    %5 = vector.load %arg4[%c0_5, %c0_6, %c0_7] : memref<2x128x1xf32, #tpu.memory_space<vmem>>, vector<1x128x1xf32>
    %6 = vector.shape_cast %5 : vector<1x128x1xf32> to vector<128x1xf32>
    %7 = vector.broadcast %6 : vector<128x1xf32> to vector<128x128xf32>
    %8 = arith.addf %4, %7 : vector<128x128xf32>
    %9 = vector.extract_strided_slice %8 {offsets = [0, 0], sizes = [64, 128], strides = [1, 1]} : vector<128x128xf32> to vector<64x128xf32>
    %10 = vector.extract_strided_slice %8 {offsets = [64, 0], sizes = [64, 128], strides = [1, 1]} : vector<128x128xf32> to vector<64x128xf32>
    %11 = arith.negf %10 : vector<64x128xf32>
    %12 = math.exp %11 : vector<64x128xf32>
    %cst_8 = arith.constant 1.000000e+00 : f32
    %13 = vector.broadcast %cst_8 : f32 to vector<64x128xf32>
    %14 = arith.addf %13, %12 : vector<64x128xf32>
    %15 = arith.divf %13, %14 : vector<64x128xf32>
    %16 = arith.subf %9, %1 : vector<64x128xf32>
    %17 = arith.mulf %15, %16 : vector<64x128xf32>
    %18 = arith.addf %1, %17 : vector<64x128xf32>
    %c1 = arith.constant 1 : index
    %c0_9 = arith.constant 0 : index
    %c0_10 = arith.constant 0 : index
    %19 = vector.load %arg3[%c1, %c0_9, %c0_10] : memref<2x128x64xf32, #tpu.memory_space<vmem>>, vector<1x128x64xf32>
    %20 = vector.shape_cast %19 : vector<1x128x64xf32> to vector<128x64xf32>
    %cst_11 = arith.constant dense<0.000000e+00> : vector<128x128xf32>
    %21 = tpu.matmul %20, %18, %cst_11 {dimension_numbers = #tpu.dot_dimension_numbers<[1], [0], [0], [1], [0, 0, 1, 1], [], []>} : vector<128x64xf32>, vector<64x128xf32>, vector<128x128xf32> -> vector<128x128xf32>
    %c1_12 = arith.constant 1 : index
    %c0_13 = arith.constant 0 : index
    %c0_14 = arith.constant 0 : index
    %22 = vector.load %arg4[%c1_12, %c0_13, %c0_14] : memref<2x128x1xf32, #tpu.memory_space<vmem>>, vector<1x128x1xf32>
    %23 = vector.shape_cast %22 : vector<1x128x1xf32> to vector<128x1xf32>
    %24 = vector.broadcast %23 : vector<128x1xf32> to vector<128x128xf32>
    %25 = arith.addf %21, %24 : vector<128x128xf32>
    %26 = vector.extract_strided_slice %25 {offsets = [0, 0], sizes = [64, 128], strides = [1, 1]} : vector<128x128xf32> to vector<64x128xf32>
    %27 = vector.extract_strided_slice %25 {offsets = [64, 0], sizes = [64, 128], strides = [1, 1]} : vector<128x128xf32> to vector<64x128xf32>
    %28 = arith.negf %27 : vector<64x128xf32>
    %29 = math.exp %28 : vector<64x128xf32>
    %cst_15 = arith.constant 1.000000e+00 : f32
    %30 = vector.broadcast %cst_15 : f32 to vector<64x128xf32>
    %31 = arith.addf %30, %29 : vector<64x128xf32>
    %32 = arith.divf %30, %31 : vector<64x128xf32>
    %33 = arith.subf %26, %18 : vector<64x128xf32>
    %34 = arith.mulf %32, %33 : vector<64x128xf32>
    %35 = arith.addf %18, %34 : vector<64x128xf32>
    %c0_16 = arith.constant 0 : index
    %c0_17 = arith.constant 0 : index
    %c0_18 = arith.constant 0 : index
    %36 = vector.load %arg5[%c0_16, %c0_17, %c0_18] : memref<1x64x128xf32, #tpu.memory_space<vmem>>, vector<1x64x128xf32>
    %37 = vector.shape_cast %36 : vector<1x64x128xf32> to vector<64x128xf32>
    %38 = vector.shape_cast %35 : vector<64x128xf32> to vector<1x64x128xf32>
    tpu.vector_store %arg5[%c0_16, %c0_17, %c0_18], %38 {strides = array<i32>} : memref<1x64x128xf32, #tpu.memory_space<vmem>>, vector<1x64x128xf32>,
    return
  }
  func.func @transform_0(%arg0: i32, %arg1: i32) -> (i32, i32, i32) {
    %c0_i32 = arith.constant 0 : i32
    %c0_i32_0 = arith.constant 0 : i32
    return %arg0, %c0_i32, %arg1 : i32, i32, i32
  }
  func.func @transform_1(%arg0: i32, %arg1: i32) -> (i32, i32, i32) {
    %c0_i32 = arith.constant 0 : i32
    %c0_i32_0 = arith.constant 0 : i32
    %c0_i32_1 = arith.constant 0 : i32
    %c0_i32_2 = arith.constant 0 : i32
    return %c0_i32, %c0_i32_0, %c0_i32_1 : i32, i32, i32
  }
  func.func @transform_2(%arg0: i32, %arg1: i32) -> (i32, i32, i32) {
    %c0_i32 = arith.constant 0 : i32
    %c0_i32_0 = arith.constant 0 : i32
    %c0_i32_1 = arith.constant 0 : i32
    %c0_i32_2 = arith.constant 0 : i32
    return %c0_i32, %c0_i32_0, %c0_i32_1 : i32, i32, i32
  }
  func.func @transform_3(%arg0: i32, %arg1: i32) -> (i32, i32, i32) {
    %c0_i32 = arith.constant 0 : i32
    %c0_i32_0 = arith.constant 0 : i32
    return %arg0, %c0_i32, %arg1 : i32, i32, i32
  }
}

</mosaic_0001>

<bundles_post_ra>
// kernel: tpu_custom_call.1
= control target key start
LH: loop header
LB: loop body
LE: loop exit
PB: predicated region body
PF: predicated region fallthrough
CT: control target
= control target key end

     0   :  { %8 = vsyncpa [#allocation4], 0  ;;  %s2137_s0 = inlined_call_operand.vmem [shape: f32[2,64,256], index: 0, kind: input, shape index: {}]   ;;  %s2138_s1 = inlined_call_operand.vmem [shape: f32[2,128,64], index: 1, kind: input, shape index: {}]   ;;  %s2139_s2 = inlined_call_operand.vmem [shape: f32[2,128,1], index: 2, kind: input, shape index: {}]   ;;  %s2140_s3 = inlined_call_operand.hbm [shape: f32[2,64,256], index: 3, kind: output, shape index: {}]  }
   0x1   :  { %10 = vsyncpa [#allocation4 + $0x1], 0  ;;  %s1604_s12 = smov 0   ;;  %s1606_s13 = smov 0  }
   0x2   :  { %s1608_s14 = smov 0   ;;  %s1610_s15 = smov 0  }
   0x3   :  { %s1612_s16 = smov 0   ;;  %s1614_s17 = smov 0  }
   0x4   :  { %s1616_s18 = smov 0   ;;  %s1618_s19 = smov 0  }
   0x5 LB: > { %s1121_s20 = sadd.s32 4294967295, %s1577_s19   ;;  %s1122_s21 = sadd.s32 4294967294, %s1577_s19   ;;  %s1577_s19 = sphi %s1618_s19, %s16_s19   ;;  %s1573_s18 = sphi %s1616_s18, %s2150_s18   ;;  %s1569_s17 = sphi %s1614_s17, %s2149_s17   ;;  %s1565_s16 = sphi %s1612_s16, %s2148_s16   ;;  %s1561_s15 = sphi %s1610_s15, %s2147_s15   ;;  %s1557_s14 = sphi %s1608_s14, %s2146_s14   ;;  %s1553_s13 = sphi %s1606_s13, %s2145_s13   ;;  %s1549_s12 = sphi %s1604_s12, %s2144_s12  }
   0x6   : > { %s25_s22 = sadd.s32 1, %s1569_s17  ;;  %s28_s23 = sadd.s32 1, %s1573_s18 }
   0x7   : > { %p26_p0 = scmp.ge.s32.totalorder %s25_s22, 2  ;;  %p44_p1 = scmp.ne.s32.totalorder %s1557_s14, %s1553_s13 }
   0x8   : > { %p45_p2 = scmp.eq.s32.totalorder %s1577_s19, 0  ;;  %p118_p5 = scmp.eq.s32.totalorder %s1121_s20, 3 }
   0x9   : > { %s2152_s22 = smov (%p26_p0, %s25_s22), 0  ;;  %s2154_s23 = smov (!%p26_p0, %s28_s23), %s1573_s18 }
   0xa   : > { %s33_s24 = ssub.s32 %s1569_s17, %s2152_s22  ;;  %p1656_p3 = por %p45_p2, %p44_p1 }
   0xb   : > { %p30_p4 = scmp.ge.s32.totalorder %s2154_s23, 2  ;;  %p123_p6 = scmp.ne.s32.totalorder %s1553_s13, %s1549_s12 }
   0xc   : > { %p124_p7 = scmp.eq.s32.totalorder %s1122_s21, 3  ;;  %p1664_p8 = por %p118_p5, %p44_p1 }
   0xd   : > { %s2156_s23 = smov (%p30_p4, %s2154_s23), 0  ;;  %s37_s30 = sadd.s32 1, %s1557_s14 }
   0xe   : > { %p1668_p9 = por %p124_p7, %p123_p6  ;;  %s32_s28 = ssub.s32 %s1573_s18, %s2156_s23 }
   0xf   : > { %s34_s29 = sor.u32 %s33_s24, %s32_s28  ;;  %p1124_p11 = scmp.ge.s32.totalorder %s1577_s19, 4 }
  0x10   : > { %p35_p10 = scmp.eq.s32.totalorder %s34_s29, 0 }
  0x11   : > { %146 = sbr.rel (%p1124_p11) target bundleno = 32 (0x20), region = 24 }
  0x12   : > { %s1676_s4 = scalar_select %p35_p10, %s1557_s14, %s37_s30  }
  0x16   : > { %149 = sbr.rel (!%p1656_p3) target bundleno = 32 (0x20), region = 28  ;;  %s151_s5 = sand.u32 (%p1656_p3), 1, %s1557_s14  }
  0x17   : > { %s1126_s6 = sshll.u32 (%p1656_p3), %s1573_s18, 4  ;;  %s1125_s7 = sshll.u32 (%p1656_p3), %s151_s5, 6 }
  0x18   : > { %s155_s8 = sadd.s32 (%p1656_p3), %s1569_s17, %s1126_s6  ;;  %s153_s21 = scalar_lea.vmem (%p1656_p3), [#allocation2], %s1125_s7 }
  0x19   : > { %s1127_s9 = sshll.u32 (%p1656_p3), %s155_s8, 3 }
  0x1a   : > { %s157_s20 = scalar_lea.vmem (%p1656_p3), %s2137_s0, %s1127_s9 }
  0x1b   : > { %v200_v0 = vld [vmem:[%s157_s20] sm:$0xff]  ;;  %v202_v1 = vld [vmem:[%s157_s20 + $0x10] sm:$0xff] }
  0x1c   : > { %v204_v2 = vld [vmem:[%s157_s20 + $0x20] sm:$0xff]  ;;  %201 = vst [vmem:[%s153_s21] sm:$0xff] %v200_v0  ;;  %203 = vst [vmem:[%s153_s21 + $0x8] sm:$0xff] %v202_v1  ;;  %v206_v3 = vld [vmem:[%s157_s20 + $0x30] sm:$0xff] }
  0x1d   : > { %205 = vst [vmem:[%s153_s21 + $0x10] sm:$0xff] %v204_v2  ;;  %v208_v4 = vld [vmem:[%s157_s20 + $0x40] sm:$0xff]  ;;  %v210_v5 = vld [vmem:[%s157_s20 + $0x50] sm:$0xff]  ;;  %207 = vst [vmem:[%s153_s21 + $0x18] sm:$0xff] %v206_v3 }
  0x1e   : > { %209 = vst [vmem:[%s153_s21 + $0x20] sm:$0xff] %v208_v4  ;;  %211 = vst [vmem:[%s153_s21 + $0x28] sm:$0xff] %v210_v5  ;;  %v212_v6 = vld [vmem:[%s157_s20 + $0x60] sm:$0xff]  ;;  %v214_v7 = vld [vmem:[%s157_s20 + $0x70] sm:$0xff] }
  0x1f   : > { %213 = vst [vmem:[%s153_s21 + $0x30] sm:$0xff] %v212_v6  ;;  %215 = vst [vmem:[%s153_s21 + $0x38] sm:$0xff] %v214_v7 }
  0x20 PF: > { %p1128_p12 = scmp.ge.s32.totalorder %s1577_s19, 1  ;;  %p220_p13 = scmp.lt.s32.totalorder %s1577_s19, 5 }
  0x22   : > { %p221_p0 = pnand %p1128_p12, %p220_p13 }
  0x23   : > { %s227_s24 = sand.u32 (!%p221_p0), 1, %s1553_s13   ;;  %s1580_s7 = smov (!%p221_p0), [#allocation3]  }
  0x24   : > { %224 = sbr.rel (%p221_p0) target bundleno = 610 (0x262), region = 66  ;;  %s1695_s29 = sshll.u32 (!%p221_p0), %s227_s24, 6 }
  0x25   : > { %s229_s30 = scalar_lea.vmem (!%p221_p0), [#allocation2], %s1695_s29  ;;  %s2051_s11 = scalar_lea.vmem (!%p221_p0), [#allocation3], %s1695_s29 }
  0x26   : > { %s1212_s29 = sshll.u32 (!%p221_p0), %s1565_s16, 4  ;;  %s1038_s16 = sshll.u32 (!%p221_p0), %s2051_s11, 4  ;;  %s2072_s16 = int_to_ptr.vmem [resolvable:$true] %s1038_s16 }
  0x27   : > { %s1035_s20 = sadd.s32 (!%p221_p0), %s1561_s15, %s1212_s29  ;;  %s2086_s5 = scalar_lea.sflag (!%p221_p0), [#allocation4], %s227_s24 }
  0x28   : > { %s1213_s21 = sshll.u32 (!%p221_p0), %s1035_s20, 7  ;;  %s1485_s6 = scalar_lea.vmem (!%p221_p0), %s2072_s16, 1024 }
  0x29   : > { %v258_v8 = vld [vmem:[%s2138_s1] sm:$0xff]  ;;  %vm370_vm0 = vcmask 523264   ;;  %v1579_v9 = vmov 0   ;;  %v1699_v10 = vld [vmem:[%s229_s30 + $0x38] sm:$0xff]  ;;  %v1701_v11 = vld [vmem:[%s229_s30 + $0x30] sm:$0xff]  ;;  %s2079_s28 = scalar_lea.hbm %s2140_s3, %s1213_s21  ;;  %p1486_p1 = scmp.ne.s32.totalorder %s2072_s16, %s1485_s6 }
  0x2a   : > { %1280 = vmatprep.mubr.msk.f32.mxu0 %vm370_vm0, %v258_v8  ;;  %1419 = vset.pattern.permute.xlu0 %v1579_v9  ;;  %v1705_v12 = vld [vmem:[%s229_s30 + $0x28] sm:$0xff]  ;;  %v1709_v13 = vld [vmem:[%s229_s30 + $0x20] sm:$0xff]  ;;  %v289_v14 = vld [vmem:[%s2139_s2 + $0x78] sm:$0xff]  ;;  %s1489_s8 = sshll.u32 %s1580_s7, 4  ;;  %s1490_s8 = int_to_ptr.vmem [resolvable:$false] %s1489_s8 }
  0x2b   : > { %1420 = vset.pattern.permute.xlu1 %v1579_v9  ;;  %1264 = vmatprep.subr.mxu0 %v1699_v10  ;;  %v287_v15 = vld [vmem:[%s2139_s2 + $0x68] sm:$0xff]  ;;  %v1719_v16 = vld [vmem:[%s229_s30 + $0x18] sm:$0xff]  ;;  %v288_v17 = vld [vmem:[%s2139_s2 + $0x70] sm:$0xff]  ;;  %p1487_p2 = pnand %p1486_p1, %p1664_p8  ;;  %s1491_s9 = scalar_lea.vmem %s1490_s8, 2048 }
  0x2c   : > { %1265 = vmatpush3.msra.mxu0 %v1699_v10  ;;  %367 = vperm.xlu0 %1419, %v289_v14   ;;  %v1726_v18 = vld [vmem:[%s229_s30 + $0x10] sm:$0xff]  ;;  %v286_v19 = vld [vmem:[%s2139_s2 + $0x60] sm:$0xff]  ;;  %v1733_v20 = vld [vmem:[%s229_s30 + $0x8] sm:$0xff]  ;;  %p1492_p4 = scmp.lt.s32.totalorder %s2072_s16, %s1490_s8  ;;  %p1493_p5 = scmp.lt.s32.totalorder %s1491_s9, %s1485_s6 }
  0x2d   : > { %1266 = vmatprep.subr.mxu0 %v1701_v11  ;;  %357 = vperm.xlu1 %1420, %v287_v15   ;;  %v285_v21 = vld [vmem:[%s2139_s2 + $0x58] sm:$0xff]  ;;  %v1740_v22 = vld [vmem:[%s229_s30] sm:$0xff]  ;;  %v284_v23 = vld [vmem:[%s2139_s2 + $0x50] sm:$0xff]  ;;  %p1488_p3 = pneg %p1487_p2 }
  0x2e   : > { %1267 = vmatpush3.msra.mxu0 %v1701_v11  ;;  %v259_v24 = vld [vmem:[%s2138_s1 + $0x8] sm:$0xff]  ;;  %v260_v25 = vld [vmem:[%s2138_s1 + $0x10] sm:$0xff]  ;;  %v282_v27 = vld [vmem:[%s2139_s2 + $0x40] sm:$0xff]  ;;  %p1494_p6 = por %p1493_p5, %p1492_p4 }
  0x2f   : > { %1268 = vmatprep.subr.mxu0 %v1705_v12  ;;  %v283_v26 = vld [vmem:[%s2139_s2 + $0x48] sm:$0xff]  ;;  %v261_v28 = vld [vmem:[%s2138_s1 + $0x18] sm:$0xff]  ;;  %v262_v29 = vld [vmem:[%s2138_s1 + $0x20] sm:$0xff] }
  0x30   : > { %1269 = vmatpush3.msra.mxu0 %v1705_v12  ;;  %362 = vperm.xlu0 %1419, %v288_v17   ;;  %v281_v30 = vld [vmem:[%s2139_s2 + $0x38] sm:$0xff]  ;;  %v280_v31 = vld [vmem:[%s2139_s2 + $0x30] sm:$0xff]  ;;  %v263_v32 = vld [vmem:[%s2138_s1 + $0x28] sm:$0xff]  ;;  %p1495_p7 = pnand %p1494_p6, %p1488_p3 }
  0x31   : > { %1270 = vmatprep.subr.mxu0 %v1709_v13  ;;  %352 = vperm.xlu1 %1420, %v286_v19   ;;  %v264_v33 = vld [vmem:[%s2138_s1 + $0x30] sm:$0xff]  ;;  %v279_v34 = vld [vmem:[%s2139_s2 + $0x28] sm:$0xff]  ;;  %v278_v35 = vld [vmem:[%s2139_s2 + $0x20] sm:$0xff] }
  0x32   : > { %1271 = vmatpush3.msra.mxu0 %v1709_v13  ;;  %v265_v36 = vld [vmem:[%s2138_s1 + $0x38] sm:$0xff]  ;;  %v266_v37 = vld [vmem:[%s2138_s1 + $0x40] sm:$0xff]  ;;  %v276_v39 = vld [vmem:[%s2139_s2 + $0x10] sm:$0xff] }
  0x33   : > { %1272 = vmatprep.subr.mxu0 %v1719_v16  ;;  %v277_v38 = vld [vmem:[%s2139_s2 + $0x18] sm:$0xff]  ;;  %v267_v40 = vld [vmem:[%s2138_s1 + $0x48] sm:$0xff]  ;;  %v268_v41 = vld [vmem:[%s2138_s1 + $0x50] sm:$0xff] }
  0x34   : > { %1273 = vmatpush3.msra.mxu0 %v1719_v16  ;;  %347 = vperm.xlu0 %1419, %v285_v21   ;;  %v275_v42 = vld [vmem:[%s2139_s2 + $0x8] sm:$0xff]  ;;  %v274_v43 = vld [vmem:[%s2139_s2] sm:$0xff]  ;;  %v269_v44 = vld [vmem:[%s2138_s1 + $0x58] sm:$0xff] }
  0x35   : > { %1274 = vmatprep.subr.mxu0 %v1726_v18  ;;  %342 = vperm.xlu1 %1420, %v284_v23   ;;  %v270_v45 = vld [vmem:[%s2138_s1 + $0x60] sm:$0xff]  ;;  %v1180_v47 = vld [vmem:[%s2139_s2 + $0xc8] sm:$0xff]  ;;  %v272_v49 = vld [vmem:[%s2138_s1 + $0x70] sm:$0xff] }
  0x36   : > { %1275 = vmatpush3.msra.mxu0 %v1726_v18  ;;  %v1179_v46 = vld [vmem:[%s2139_s2 + $0xc0] sm:$0xff]  ;;  %v271_v48 = vld [vmem:[%s2138_s1 + $0x68] sm:$0xff]  ;;  %v1181_v50 = vld [vmem:[%s2139_s2 + $0xd0] sm:$0xff] }
  0x37   : > { %1276 = vmatprep.subr.mxu0 %v1733_v20  ;;  %v1182_v51 = vld [vmem:[%s2139_s2 + $0xd8] sm:$0xff]  ;;  %v1183_v53 = vld [vmem:[%s2139_s2 + $0xe0] sm:$0xff]  ;;  %v1184_v54 = vld [vmem:[%s2139_s2 + $0xe8] sm:$0xff] }
  0x38   : > { %1277 = vmatpush3.msra.mxu0 %v1733_v20  ;;  %337 = vperm.xlu0 %1419, %v283_v26   ;;  %v273_v52 = vld [vmem:[%s2138_s1 + $0x78] sm:$0xff]  ;;  %v1185_v55 = vld [vmem:[%s2139_s2 + $0xf0] sm:$0xff]  ;;  %v1171_v57 = vld [vmem:[%s2139_s2 + $0x80] sm:$0xff] }
  0x39   : > { %1278 = vmatprep.subr.mxu0 %v1740_v22  ;;  %332 = vperm.xlu1 %1420, %v282_v27   ;;  %v1186_v56 = vld [vmem:[%s2139_s2 + $0xf8] sm:$0xff]  ;;  %v1172_v58 = vld [vmem:[%s2139_s2 + $0x88] sm:$0xff]  ;;  %v1173_v59 = vld [vmem:[%s2139_s2 + $0x90] sm:$0xff] }
  0x3a   : > { %1279 = vmatpush3.msra.mxu0 %v1740_v22  ;;  %v1174_v60 = vld [vmem:[%s2139_s2 + $0x98] sm:$0xff]  ;;  %v1175_v61 = vld [vmem:[%s2139_s2 + $0xa0] sm:$0xff]  ;;  %v1176_v62 = vld [vmem:[%s2139_s2 + $0xa8] sm:$0xff] }
  0x3b   : > { %1281 = vmatmul.mubr.msk.f32.vlgmr.msra.gmra.mxu0 %vm370_vm0, %v259_v24  ;;  %v1177_v63 = vld [vmem:[%s2139_s2 + $0xb0] sm:$0xff]  ;;  %v1178_v0 = vld [vmem:[%s2139_s2 + $0xb8] sm:$0xff]  ;;  %v1155_v1 = vld [vmem:[%s2138_s1 + $0x80] sm:$0xff] }
  0x3c   : > { %1283 = vmatprep.mubr.msk.f32.mxu0 %vm370_vm0, %v260_v25  ;;  %327 = vperm.xlu0 %1419, %v281_v30  }
  0x3d   : > { %322 = vperm.xlu1 %1420, %v280_v31   ;;  %1320 = vmatprep.mubr.msk.f32.mxu1 %vm370_vm0, %v1155_v1 }
  0x3f   : > { %1284 = vmatmul.mubr.msk.f32.gmra.mxu0 %vm370_vm0, %v261_v28 }
  0x40   : > { %1286 = vmatprep.mubr.msk.f32.mxu0 %vm370_vm0, %v262_v29  ;;  %317 = vperm.xlu0 %1419, %v279_v34  }
  0x41   : > { %312 = vperm.xlu1 %1420, %v278_v35  }
  0x43   : > { %1287 = vmatmul.mubr.msk.f32.gmra.mxu0 %vm370_vm0, %v263_v32 }
  0x44   : > { %1289 = vmatprep.mubr.msk.f32.mxu0 %vm370_vm0, %v264_v33  ;;  %307 = vperm.xlu0 %1419, %v277_v38  }
  0x45   : > { %302 = vperm.xlu1 %1420, %v276_v39  }
  0x47   : > { %1290 = vmatmul.mubr.msk.f32.gmra.mxu0 %vm370_vm0, %v265_v36 }
  0x48   : > { %1292 = vmatprep.mubr.msk.f32.mxu0 %vm370_vm0, %v266_v37  ;;  %297 = vperm.xlu0 %1419, %v275_v42  }
  0x49   : > { %292 = vperm.xlu1 %1420, %v274_v43  }
  0x4b   : > { %1293 = vmatmul.mubr.msk.f32.gmra.mxu0 %vm370_vm0, %v267_v40 }
  0x4c   : > { %1295 = vmatprep.mubr.msk.f32.mxu0 %vm370_vm0, %v268_v41  ;;  %712 = vperm.xlu0 %1419, %v1179_v46  }
  0x4d   : > { %717 = vperm.xlu1 %1420, %v1180_v47  }
  0x4f   : > { %1296 = vmatmul.mubr.msk.f32.gmra.mxu0 %vm370_vm0, %v269_v44 }
  0x50   : > { %1298 = vmatprep.mubr.msk.f32.mxu0 %vm370_vm0, %v270_v45  ;;  %722 = vperm.xlu0 %1419, %v1181_v50  }
  0x51   : > { %727 = vperm.xlu1 %1420, %v1182_v51  }
  0x53   : > { %1299 = vmatmul.mubr.msk.f32.gmra.mxu0 %vm370_vm0, %v271_v48 }
  0x54   : > { %1301 = vmatprep.mubr.msk.f32.mxu0 %vm370_vm0, %v272_v49  ;;  %732 = vperm.xlu0 %1419, %v1183_v53  }
  0x55   : > { %737 = vperm.xlu1 %1420, %v1184_v54  }
  0x57   : > { %1302 = vmatmul.mubr.msk.f32.gmra.mxu0 %vm370_vm0, %v273_v52 }
  0x58   : > { %742 = vperm.xlu0 %1419, %v1185_v55  }
  0x59   : > { %747 = vperm.xlu1 %1420, %v1186_v56  }
  0x5c   : > { %672 = vperm.xlu0 %1419, %v1171_v57  }
  0x5d   : > { %677 = vperm.xlu1 %1420, %v1172_v58  }
  0x60   : > { %682 = vperm.xlu0 %1419, %v1173_v59  }
  0x61   : > { %687 = vperm.xlu1 %1420, %v1174_v60  }
  0x64   : > { %692 = vperm.xlu0 %1419, %v1175_v61  }
  0x65   : > { %697 = vperm.xlu1 %1420, %v1176_v62  }
  0x68   : > { %702 = vperm.xlu0 %1419, %v1177_v63  }
  0x69   : > { %707 = vperm.xlu1 %1420, %v1178_v0  }
  0xa7   : > { %v368_v7 = vpop.permute.xlu0 %367 }
  0xa8   : > { %v358_v9 = vpop.permute.xlu1 %357 }
  0xab   : > { %v363_v17 = vpop.permute.xlu0 %362 }
  0xac   : > { %v353_v21 = vpop.permute.xlu1 %352 }
  0xaf   : > { %v348_v25 = vpop.permute.xlu0 %347 }
  0xb0   : > { %v343_v27 = vpop.permute.xlu1 %342 }
  0xb3   : > { %v338_v35 = vpop.permute.xlu0 %337 }
  0xb4   : > { %v333_v41 = vpop.permute.xlu1 %332 }
  0xb7   : > { %v328_v59 = vpop.permute.xlu0 %327 }
  0xb8   : > { %v323_v63 = vpop.permute.xlu1 %322 }
  0xfb   : > { %v1891_v2 = vpop.f32.mrf.mxu0 }
  0xfd   : > { %v1893_v3 = vpop.f32.mrf.mxu0 }
  0xff   : > { %v1895_v4 = vpop.f32.mrf.mxu0 }
 0x101   : > { %v1897_v5 = vpop.f32.mrf.mxu0 }
 0x103   : > { %v1899_v6 = vpop.f32.mrf.mxu0 }
 0x105   : > { %v1901_v8 = vpop.f32.mrf.mxu0 }
 0x107   : > { %v1903_v14 = vpop.f32.mrf.mxu0 }
 0x109   : > { %v1905_v15 = vpop.f32.mrf.mxu0 }
 0x10b   : > { %v1294_v19 = vpop.f32.mrf.mxu0 }
 0x10c   : > { %v531_v38 = vadd.f32 %v1294_v19, %v338_v35  ;;  %v313_v19 = vpop.permute.xlu1 %312 }
 0x10d   : > { %v525_v23 = vpop.f32.mrf.mxu0 }
 0x10e   : > { %v526_v44 = vadd.f32 %v525_v23, %v333_v41  ;;  %v1148_v47 = vmul.f32 -1.442695, %v531_v38 }
 0x10f   : > { %v1297_v24 = vpop.f32.mrf.mxu0 }
 0x110   : > { %v541_v28 = vadd.f32 %v1297_v24, %v348_v25  ;;  %v1147_v49 = vmul.f32 -1.442695, %v526_v44  ;;  %v516_v24 = vadd.f32 %v1905_v15, %v323_v63  ;;  %v1169_v63 = vld [vmem:[%s2138_s1 + $0xf0] sm:$0xff] }
 0x111   : > { %v535_v26 = vpop.f32.mrf.mxu0 }
 0x112   : > { %v536_v31 = vadd.f32 %v535_v26, %v343_v27  ;;  %v1150_v36 = vmul.f32 -1.442695, %v541_v28  ;;  %v506_v27 = vadd.f32 %v1901_v8, %v313_v19 }
 0x113   : > { %v1300_v29 = vpop.f32.mrf.mxu0 }
 0x114   : > { %v551_v30 = vadd.f32 %v1300_v29, %v358_v9  ;;  %v1149_v42 = vmul.f32 -1.442695, %v536_v31  ;;  %v318_v9 = vpop.permute.xlu0 %317  ;;  %v616_v35 = vsub.f32 %v506_v27, %v1709_v13 }
 0x115   : > { %v545_v32 = vpop.f32.mrf.mxu0  ;;  %v511_v23 = vadd.f32 %v1899_v6, %v318_v9 }
 0x116   : > { %v1152_v33 = vmul.f32 -1.442695, %v551_v30  ;;  %v546_v34 = vadd.f32 %v545_v32, %v353_v21  ;;  %v521_v21 = vadd.f32 %v1903_v14, %v328_v59  ;;  %v303_v30 = vpop.permute.xlu1 %302  ;;  %v618_v14 = vsub.f32 %v516_v24, %v1701_v11  ;;  %v1165_v59 = vld [vmem:[%s2138_s1 + $0xd0] sm:$0xff] }
 0x117   : > { %v1303_v37 = vpop.f32.mrf.mxu0  ;;  %v496_v15 = vadd.f32 %v1897_v5, %v303_v30 }
 0x118   : > { %1421 = vpow2.f32 %v1152_v33  ;;  %v1151_v39 = vmul.f32 -1.442695, %v546_v34  ;;  %v561_v40 = vadd.f32 %v1303_v37, %v368_v7  ;;  %v308_v25 = vpop.permute.xlu0 %307  ;;  %v619_v28 = vsub.f32 %v521_v21, %v1699_v10 }
 0x119   : > { %v555_v43 = vpop.f32.mrf.mxu0  ;;  %v501_v32 = vadd.f32 %v1895_v4, %v308_v25  ;;  %v617_v33 = vsub.f32 %v511_v23, %v1705_v12  ;;  %v614_v44 = vsub.f32 %v496_v15, %v1726_v18 }
 0x11a   : > { %1423 = vpow2.f32 %v1151_v39  ;;  %v1154_v45 = vmul.f32 -1.442695, %v561_v40  ;;  %v556_v46 = vadd.f32 %v555_v43, %v363_v17  ;;  %v293_v43 = vpop.permute.xlu1 %292 }
 0x11b   : > { %1425 = vpow2.f32 %v1150_v36  ;;  %v615_v4 = vsub.f32 %v501_v32, %v1719_v16 }
 0x11c   : > { %1427 = vpow2.f32 %v1154_v45  ;;  %v1153_v48 = vmul.f32 -1.442695, %v556_v46  ;;  %v298_v39 = vpop.permute.xlu0 %297 }
 0x11d   : > { %1429 = vpow2.f32 %v1149_v42  ;;  %v491_v40 = vadd.f32 %v1891_v2, %v298_v39 }
 0x11e   : > { %1431 = vpow2.f32 %v1153_v48  ;;  %v718_v21 = vpop.permute.xlu1 %717 }
 0x11f   : > { %1433 = vpow2.f32 %v1148_v47 }
 0x120   : > { %1435 = vpow2.f32 %v1147_v49  ;;  %v713_v24 = vpop.permute.xlu0 %712 }
 0x122   : > { %v728_v27 = vpop.permute.xlu1 %727 }
 0x124   : > { %v723_v30 = vpop.permute.xlu0 %722 }
 0x125   : > { %v1422_v50 = vpop.eup %1421 }
 0x126   : > { %v593_v52 = vadd.f32 1.0, %v1422_v50  ;;  %v738_v15 = vpop.permute.xlu1 %737 }
 0x127   : > { %v1424_v51 = vpop.eup %1423 }
 0x128   : > { %v1426_v53 = vpop.eup %1425  ;;  %v592_v55 = vadd.f32 1.0, %v1424_v51  ;;  %1437 = vrcp.f32 %v593_v52 }
 0x129   : > { %v1428_v54 = vpop.eup %1427  ;;  %v591_v60 = vadd.f32 1.0, %v1426_v53  ;;  %v1159_v53 = vld [vmem:[%s2138_s1 + $0xa0] sm:$0xff] }
 0x12a   : > { %v1430_v56 = vpop.eup %1429  ;;  %v595_v57 = vadd.f32 1.0, %v1428_v54  ;;  %v1160_v54 = vld [vmem:[%s2138_s1 + $0xa8] sm:$0xff] }
 0x12b   : > { %v1432_v58 = vpop.eup %1431  ;;  %v590_v0 = vadd.f32 1.0, %v1430_v56  ;;  %v1162_v56 = vld [vmem:[%s2138_s1 + $0xb8] sm:$0xff] }
 0x12c   : > { %1439 = vrcp.f32 %v595_v57  ;;  %v594_v61 = vadd.f32 1.0, %v1432_v58  ;;  %v1434_v62 = vpop.eup %1433  ;;  %v1163_v57 = vld [vmem:[%s2138_s1 + $0xc0] sm:$0xff]  ;;  %v1164_v58 = vld [vmem:[%s2138_s1 + $0xc8] sm:$0xff] }
 0x12d   : > { %1441 = vrcp.f32 %v592_v55  ;;  %v1436_v1 = vpop.eup %1435  ;;  %v589_v7 = vadd.f32 1.0, %v1434_v62  ;;  %v1161_v55 = vld [vmem:[%s2138_s1 + $0xb0] sm:$0xff]  ;;  %v1168_v62 = vld [vmem:[%s2138_s1 + $0xe8] sm:$0xff] }
 0x12e   : > { %1443 = vrcp.f32 %v594_v61  ;;  %v588_v17 = vadd.f32 1.0, %v1436_v1  ;;  %v1167_v61 = vld [vmem:[%s2138_s1 + $0xe0] sm:$0xff] }
 0x12f   : > { %1445 = vrcp.f32 %v591_v60  ;;  %v1166_v60 = vld [vmem:[%s2138_s1 + $0xd8] sm:$0xff] }
 0x130   : > { %1447 = vrcp.f32 %v590_v0  ;;  %v1170_v0 = vld [vmem:[%s2138_s1 + $0xf8] sm:$0xff] }
 0x131   : > { %1449 = vrcp.f32 %v589_v7 }
 0x132   : > { %1451 = vrcp.f32 %v588_v17 }
 0x135   : > { %v1438_v26 = vpop.eup %1437 }
 0x136   : > { %v625_v37 = vmul.f32 %v1438_v26, %v617_v33 }
 0x138   : > { %v1931_v2 = vadd.f32 %v625_v37, %v1705_v12 }
 0x139   : > { %v1440_v29 = vpop.eup %1439 }
 0x13a   : > { %v1442_v31 = vpop.eup %1441  ;;  %v627_v34 = vmul.f32 %v1440_v29, %v619_v28 }
 0x13b   : > { %v1444_v6 = vpop.eup %1443  ;;  %v624_v42 = vmul.f32 %v1442_v31, %v616_v35 }
 0x13c   : > { %v1918_v36 = vadd.f32 %v627_v34, %v1699_v10  ;;  %v626_v8 = vmul.f32 %v1444_v6, %v618_v14  ;;  %v1446_v38 = vpop.eup %1445  ;;  %v486_v10 = vadd.f32 %v1893_v3, %v293_v43 }
 0x13d   : > { %v1448_v5 = vpop.eup %1447  ;;  %v623_v45 = vmul.f32 %v1446_v38, %v615_v4  ;;  %v1937_v47 = vadd.f32 %v624_v42, %v1709_v13  ;;  %v733_v38 = vpop.permute.xlu0 %732 }
 0x13e   : > { %1304 = vmatprep.subr.mxu1 %v1918_v36  ;;  %v1924_v41 = vadd.f32 %v626_v8, %v1701_v11  ;;  %v1450_v46 = vpop.eup %1449  ;;  %v613_v11 = vsub.f32 %v491_v40, %v1733_v20  ;;  %v622_v48 = vmul.f32 %v1448_v5, %v614_v44  ;;  %v612_v49 = vsub.f32 %v486_v10, %v1740_v22  ;;  %v748_v10 = vpop.permute.xlu1 %747 }
 0x13f   : > { %1305 = vmatpush3.msra.mxu1 %v1918_v36  ;;  %v1452_v3 = vpop.eup %1451  ;;  %v1943_v12 = vadd.f32 %v623_v45, %v1719_v16 }
 0x140   : > { %1306 = vmatprep.subr.mxu1 %v1924_v41  ;;  %v621_v50 = vmul.f32 %v1450_v46, %v613_v11  ;;  %v1948_v51 = vadd.f32 %v622_v48, %v1726_v18  ;;  %v620_v13 = vmul.f32 %v1452_v3, %v612_v49  ;;  %v1156_v18 = vld [vmem:[%s2138_s1 + $0x88] sm:$0xff] }
 0x141   : > { %1307 = vmatpush3.msra.mxu1 %v1924_v41  ;;  %v743_v11 = vpop.permute.xlu0 %742 }
 0x142   : > { %1308 = vmatprep.subr.mxu1 %v1931_v2  ;;  %v1953_v52 = vadd.f32 %v621_v50, %v1733_v20  ;;  %v1958_v16 = vadd.f32 %v620_v13, %v1740_v22  ;;  %v1157_v20 = vld [vmem:[%s2138_s1 + $0x90] sm:$0xff]  ;;  %v1158_v22 = vld [vmem:[%s2138_s1 + $0x98] sm:$0xff] }
 0x143   : > { %1309 = vmatpush3.msra.mxu1 %v1931_v2 }
 0x144   : > { %1310 = vmatprep.subr.mxu1 %v1937_v47 }
 0x145   : > { %1311 = vmatpush3.msra.mxu1 %v1937_v47 }
 0x146   : > { %1312 = vmatprep.subr.mxu1 %v1943_v12 }
 0x147   : > { %1313 = vmatpush3.msra.mxu1 %v1943_v12 }
 0x148   : > { %1314 = vmatprep.subr.mxu1 %v1948_v51 }
 0x149   : > { %1315 = vmatpush3.msra.mxu1 %v1948_v51 }
 0x14a   : > { %1316 = vmatprep.subr.mxu1 %v1953_v52 }
 0x14b   : > { %1317 = vmatpush3.msra.mxu1 %v1953_v52 }
 0x14c   : > { %1318 = vmatprep.subr.mxu1 %v1958_v16 }
 0x14d   : > { %1319 = vmatpush3.msra.mxu1 %v1958_v16 }
 0x14e   : > { %1321 = vmatmul.mubr.msk.f32.vlgmr.msra.gmra.mxu1 %vm370_vm0, %v1156_v18 }
 0x14f   : > { %1323 = vmatprep.mubr.msk.f32.mxu1 %vm370_vm0, %v1157_v20 }
 0x152   : > { %1324 = vmatmul.mubr.msk.f32.gmra.mxu1 %vm370_vm0, %v1158_v22 }
 0x153   : > { %1326 = vmatprep.mubr.msk.f32.mxu1 %vm370_vm0, %v1159_v53 }
 0x156   : > { %1327 = vmatmul.mubr.msk.f32.gmra.mxu1 %vm370_vm0, %v1160_v54  ;;  %v678_v54 = vpop.permute.xlu1 %677 }
 0x157   : > { %1329 = vmatprep.mubr.msk.f32.mxu1 %vm370_vm0, %v1161_v55 }
 0x15a   : > { %1330 = vmatmul.mubr.msk.f32.gmra.mxu1 %vm370_vm0, %v1162_v56 }
 0x15b   : > { %1332 = vmatprep.mubr.msk.f32.mxu1 %vm370_vm0, %v1163_v57  ;;  %v673_v57 = vpop.permute.xlu0 %672 }
 0x15e   : > { %1333 = vmatmul.mubr.msk.f32.gmra.mxu1 %vm370_vm0, %v1164_v58 }
 0x15f   : > { %1335 = vmatprep.mubr.msk.f32.mxu1 %vm370_vm0, %v1165_v59 }
 0x162   : > { %1336 = vmatmul.mubr.msk.f32.gmra.mxu1 %vm370_vm0, %v1166_v60 }
 0x163   : > { %1338 = vmatprep.mubr.msk.f32.mxu1 %vm370_vm0, %v1167_v61 }
 0x166   : > { %1339 = vmatmul.mubr.msk.f32.gmra.mxu1 %vm370_vm0, %v1168_v62  ;;  %v688_v62 = vpop.permute.xlu1 %687 }
 0x167   : > { %1341 = vmatprep.mubr.msk.f32.mxu1 %vm370_vm0, %v1169_v63 }
 0x16a   : > { %1342 = vmatmul.mubr.msk.f32.gmra.mxu1 %vm370_vm0, %v1170_v0 }
 0x20e   : > { %v2023_v1 = vpop.f32.mrf.mxu1 }
 0x20f   : > { %v870_v63 = vadd.f32 %v2023_v1, %v678_v54 }
 0x210   : > { %v2025_v7 = vpop.f32.mrf.mxu1 }
 0x212   : > { %v2027_v9 = vpop.f32.mrf.mxu1 }
 0x214   : > { %v2029_v17 = vpop.f32.mrf.mxu1 }
 0x216   : > { %v2031_v19 = vpop.f32.mrf.mxu1 }
 0x218   : > { %v2033_v23 = vpop.f32.mrf.mxu1 }
 0x21a   : > { %v2035_v25 = vpop.f32.mrf.mxu1 }
 0x21c   : > { %v2037_v26 = vpop.f32.mrf.mxu1 }
 0x21e   : > { %v1334_v28 = vpop.f32.mrf.mxu1 }
 0x21f   : > { %v910_v29 = vadd.f32 %v1334_v28, %v718_v21 }
 0x220   : > { %v904_v31 = vpop.f32.mrf.mxu1 }
 0x221   : > { %v1204_v32 = vmul.f32 -1.442695, %v910_v29  ;;  %v905_v33 = vadd.f32 %v904_v31, %v713_v24  ;;  %v683_v24 = vpop.permute.xlu0 %682  ;;  %v880_v31 = vadd.f32 %v2027_v9, %v688_v62 }
 0x222   : > { %v1337_v14 = vpop.f32.mrf.mxu1 }
 0x223   : > { %1453 = vpow2.f32 %v1204_v32  ;;  %v1203_v34 = vmul.f32 -1.442695, %v905_v33  ;;  %v920_v6 = vadd.f32 %v1337_v14, %v728_v27  ;;  %v865_v27 = vadd.f32 %v2025_v7, %v673_v57  ;;  %v698_v14 = vpop.permute.xlu1 %697 }
 0x224   : > { %v914_v35 = vpop.f32.mrf.mxu1 }
 0x225   : > { %1455 = vpow2.f32 %v1203_v34  ;;  %v1206_v8 = vmul.f32 -1.442695, %v920_v6  ;;  %v915_v37 = vadd.f32 %v914_v35, %v723_v30  ;;  %v992_v30 = vsub.f32 %v870_v63, %v1953_v52  ;;  %v693_v7 = vpop.permute.xlu0 %692 }
 0x226   : > { %v1340_v39 = vpop.f32.mrf.mxu1  ;;  %v991_v1 = vsub.f32 %v865_v27, %v1958_v16  ;;  %v875_v34 = vadd.f32 %v2029_v17, %v683_v24  ;;  %v994_v35 = vsub.f32 %v880_v31, %v1943_v12 }
 0x227   : > { %1457 = vpow2.f32 %v1206_v8  ;;  %v1205_v40 = vmul.f32 -1.442695, %v915_v37  ;;  %v930_v4 = vadd.f32 %v1340_v39, %v738_v15  ;;  %v890_v8 = vadd.f32 %v2031_v19, %v698_v14  ;;  %v708_v19 = vpop.permute.xlu1 %707 }
 0x228   : > { %v924_v42 = vpop.f32.mrf.mxu1  ;;  %v993_v39 = vsub.f32 %v875_v34, %v1948_v51 }
 0x229   : > { %1459 = vpow2.f32 %v1205_v40  ;;  %v1208_v5 = vmul.f32 -1.442695, %v930_v4  ;;  %v925_v43 = vadd.f32 %v924_v42, %v733_v38  ;;  %v885_v40 = vadd.f32 %v2033_v23, %v693_v7 }
 0x22a   : > { %v1343_v44 = vpop.f32.mrf.mxu1 }
 0x22b   : > { %1461 = vpow2.f32 %v1208_v5  ;;  %v1207_v45 = vmul.f32 -1.442695, %v925_v43  ;;  %v940_v46 = vadd.f32 %v1343_v44, %v748_v10  ;;  %v900_v5 = vadd.f32 %v2035_v25, %v708_v19  ;;  %v703_v44 = vpop.permute.xlu0 %702 }
 0x22c   : > { %v934_v48 = vpop.f32.mrf.mxu1 }
 0x22d   : > { %1463 = vpow2.f32 %v1207_v45  ;;  %v1210_v3 = vmul.f32 -1.442695, %v940_v46  ;;  %v935_v49 = vadd.f32 %v934_v48, %v743_v11  ;;  %v895_v45 = vadd.f32 %v2037_v26, %v703_v44 }
 0x22e   : > { %v998_v25 = vsub.f32 %v900_v5, %v1918_v36 }
 0x22f   : > { %1465 = vpow2.f32 %v1210_v3  ;;  %v1209_v50 = vmul.f32 -1.442695, %v935_v49  ;;  %v997_v26 = vsub.f32 %v895_v45, %v1924_v41 }
 0x230   : > { %v1454_v13 = vpop.eup %1453 }
 0x231   : > { %v968_v18 = vadd.f32 1.0, %v1454_v13  ;;  %1467 = vpow2.f32 %v1209_v50 }
 0x232   : > { %v1456_v20 = vpop.eup %1455 }
 0x233   : > { %1469 = vrcp.f32 %v968_v18  ;;  %v967_v22 = vadd.f32 1.0, %v1456_v20 }
 0x234   : > { %v1458_v53 = vpop.eup %1457 }
 0x235   : > { %1471 = vrcp.f32 %v967_v22  ;;  %v970_v55 = vadd.f32 1.0, %v1458_v53 }
 0x236   : > { %v1460_v56 = vpop.eup %1459 }
 0x237   : > { %1473 = vrcp.f32 %v970_v55  ;;  %v969_v58 = vadd.f32 1.0, %v1460_v56 }
 0x238   : > { %v1462_v59 = vpop.eup %1461 }
 0x239   : > { %1475 = vrcp.f32 %v969_v58  ;;  %v972_v60 = vadd.f32 1.0, %v1462_v59 }
 0x23a   : > { %v1464_v61 = vpop.eup %1463 }
 0x23b   : > { %1477 = vrcp.f32 %v972_v60  ;;  %v971_v0 = vadd.f32 1.0, %v1464_v61 }
 0x23c   : > { %v1466_v21 = vpop.eup %1465 }
 0x23d   : > { %1479 = vrcp.f32 %v971_v0  ;;  %v974_v28 = vadd.f32 1.0, %v1466_v21 }
 0x23e   : > { %v1468_v29 = vpop.eup %1467 }
 0x23f   : > { %1481 = vrcp.f32 %v974_v28  ;;  %v973_v32 = vadd.f32 1.0, %v1468_v29 }
 0x240   : > { %v1470_v33 = vpop.eup %1469 }
 0x241   : > { %v1000_v6 = vmul.f32 %v1470_v33, %v992_v30  ;;  %1483 = vrcp.f32 %v973_v32 }
 0x242   : > { %v1472_v15 = vpop.eup %1471 }
 0x243   : > { %v1008_v37 = vadd.f32 %v1000_v6, %v1953_v52  ;;  %v999_v9 = vmul.f32 %v1472_v15, %v991_v1  ;;  %v996_v52 = vsub.f32 %v890_v8, %v1931_v2 }
 0x244   : > { %v1474_v38 = vpop.eup %1473 }
 0x245   : > { %1016 = vst [vmem:[%s2051_s11 + $0x8] sm:$0xff] %v1008_v37  ;;  %v1007_v17 = vadd.f32 %v999_v9, %v1958_v16  ;;  %v1002_v4 = vmul.f32 %v1474_v38, %v994_v35  ;;  %v995_v16 = vsub.f32 %v885_v40, %v1937_v47 }
 0x246   : > { %v1476_v42 = vpop.eup %1475 }
 0x247   : > { %1015 = vst [vmem:[%s2051_s11] sm:$0xff] %v1007_v17  ;;  %v1010_v23 = vadd.f32 %v1002_v4, %v1943_v12  ;;  %v1001_v43 = vmul.f32 %v1476_v42, %v993_v39 }
 0x248   : > { %v1478_v10 = vpop.eup %1477 }
 0x249   : > { %1018 = vst [vmem:[%s2051_s11 + $0x18] sm:$0xff] %v1010_v23  ;;  %v1009_v46 = vadd.f32 %v1001_v43, %v1948_v51  ;;  %v1004_v11 = vmul.f32 %v1478_v10, %v996_v52 }
 0x24a   : > { %v1480_v48 = vpop.eup %1479 }
 0x24b   : > { %1017 = vst [vmem:[%s2051_s11 + $0x10] sm:$0xff] %v1009_v46  ;;  %v1012_v12 = vadd.f32 %v1004_v11, %v1931_v2  ;;  %v1003_v3 = vmul.f32 %v1480_v48, %v995_v16 }
 0x24c   : > { %v1482_v49 = vpop.eup %1481 }
 0x24d   : > { %1020 = vst [vmem:[%s2051_s11 + $0x28] sm:$0xff] %v1012_v12  ;;  %v1011_v51 = vadd.f32 %v1003_v3, %v1937_v47  ;;  %v1006_v50 = vmul.f32 %v1482_v49, %v998_v25 }
 0x24e   : > { %v1484_v13 = vpop.eup %1483 }
 0x24f   : > { %1019 = vst [vmem:[%s2051_s11 + $0x20] sm:$0xff] %v1011_v51  ;;  %v1014_v2 = vadd.f32 %v1006_v50, %v1918_v36  ;;  %v1005_v18 = vmul.f32 %v1484_v13, %v997_v26 }
 0x251   : > { %1022 = vst [vmem:[%s2051_s11 + $0x38] sm:$0xff] %v1014_v2  ;;  %v1013_v47 = vadd.f32 %v1005_v18, %v1924_v41 }
 0x253   : > { %1021 = vst [vmem:[%s2051_s11 + $0x30] sm:$0xff] %v1013_v47 }
 0x254   : > { %1498 = shalt.err (!%p1495_p7)
}
 0x255   : > { %s1499_s24 = scalar_lea.hbm %s2079_s28, 1024  ;;  %s1503_s11 = scalar_lea.hbm %s2140_s3, 4096 }
 0x256   : > { %p1500_p10 = scmp.ne.s32.totalorder %s2079_s28, %s1499_s24  ;;  %p1504_p13 = scmp.lt.s32.totalorder %s2079_s28, %s2140_s3 }
 0x257   : > { %p1505_p0 = scmp.lt.s32.totalorder %s1503_s11, %s1499_s24 }
 0x258   : > { %p1501_p11 = pnand %p1500_p10, %p1664_p8 }
 0x259   : > { %p1506_p1 = por %p1505_p0, %p1504_p13 }
 0x25a   : > { %p1502_p12 = pneg %p1501_p11 }
 0x25c   : > { %p1507_p2 = pnand %p1506_p1, %p1502_p12 }
 0x25e   : > { %1510 = shalt.err (!%p1507_p2)
}
 0x25f   : > { %s1581_s21 = smov 128   ;;  %s1582_s15 = smov 256  }
 0x260   : > { %s1583_s25 = smov 8  }
 0x261   : > { %1344 = dma.vmem_to_hbm [thread:$0]  (%p1664_p8), %s2072_s16, 1024, %s2079_s28, %s2086_s5, %s1581_s21, %s1582_s15, %s1583_s25  }
 0x262 PF: > { %p1350_p3 = scmp.ge.s32.totalorder %s1577_s19, 2  ;;  %s1053_s6 = sand.u32 1, %s1549_s12  }
 0x263   : > { %s1054_s7 = scalar_lea.sflag [#allocation4], %s1053_s6 }
 0x264   : > { %p1347_p4 = pnand %p1350_p3, %p1668_p9 }
 0x266   : > { %p1348_p5 = pneg %p1347_p4 }
 0x268   : > { %1544 = dma.done.wait (%p1348_p5), %s1054_s7, 1024  }
 0x269   : > { %1546 = vsyncadd (%p1348_p5), %s1054_s7, 4294966272  ;;  %s16_s19 = sadd.s32 1, %s1577_s19   ;;  %s2144_s12 = smov %s1553_s13 }
 0x26a   : > { %p13_p6 = scmp.ge.s32.totalorder %s16_s19, 6   ;;  %s2145_s13 = smov %s1557_s14 }
 0x26b   : > { %s2146_s14 = smov %s1676_s4  ;;  %s2147_s15 = smov %s1569_s17 }
 0x26c   : > { %s2148_s16 = smov %s1573_s18  ;;  %s2149_s17 = smov %s2152_s22 }
 0x26d   : > { %s2150_s18 = smov %s2156_s23  ;;  %15 = sbr.rel (!%p13_p6) target bundleno = 5 (0x5), region = 112 }
 0x272   :  { %1059 = vsyncpa [#allocation4], 1 }
 0x273   :  { %1061 = vsyncpa [#allocation4 + $0x1], 1 }

// kernel: tpu_custom_call.1
= control target key start
LH: loop header
LB: loop body
LE: loop exit
PB: predicated region body
PF: predicated region fallthrough
CT: control target
= control target key end

     0   :  { %8 = vsyncpa [#allocation4], 0  ;;  %s2137_s0 = inlined_call_operand.vmem [shape: f32[2,64,256], index: 0, kind: input, shape index: {}]   ;;  %s2138_s1 = inlined_call_operand.vmem [shape: f32[2,128,64], index: 1, kind: input, shape index: {}]   ;;  %s2139_s2 = inlined_call_operand.vmem [shape: f32[2,128,1], index: 2, kind: input, shape index: {}]   ;;  %s2140_s3 = inlined_call_operand.hbm [shape: f32[2,64,256], index: 3, kind: output, shape index: {}]  }
   0x1   :  { %10 = vsyncpa [#allocation4 + $0x1], 0  ;;  %s1604_s12 = smov 0   ;;  %s1606_s13 = smov 0  }
   0x2   :  { %s1608_s14 = smov 0   ;;  %s1610_s15 = smov 0  }
   0x3   :  { %s1612_s16 = smov 0   ;;  %s1614_s17 = smov 0  }
   0x4   :  { %s1616_s18 = smov 0   ;;  %s1618_s19 = smov 0  }
   0x5 LB: > { %s1121_s20 = sadd.s32 4294967295, %s1577_s19   ;;  %s1122_s21 = sadd.s32 4294967294, %s1577_s19   ;;  %s1577_s19 = sphi %s1618_s19, %s16_s19   ;;  %s1573_s18 = sphi %s1616_s18, %s2150_s18   ;;  %s1569_s17 = sphi %s1614_s17, %s2149_s17   ;;  %s1565_s16 = sphi %s1612_s16, %s2148_s16   ;;  %s1561_s15 = sphi %s1610_s15, %s2147_s15   ;;  %s1557_s14 = sphi %s1608_s14, %s2146_s14   ;;  %s1553_s13 = sphi %s1606_s13, %s2145_s13   ;;  %s1549_s12 = sphi %s1604_s12, %s2144_s12  }
   0x6   : > { %s25_s22 = sadd.s32 1, %s1569_s17  ;;  %s28_s23 = sadd.s32 1, %s1573_s18 }
   0x7   : > { %p26_p0 = scmp.ge.s32.totalorder %s25_s22, 2  ;;  %p44_p1 = scmp.ne.s32.totalorder %s1557_s14, %s1553_s13 }
   0x8   : > { %p45_p2 = scmp.eq.s32.totalorder %s1577_s19, 0  ;;  %p118_p5 = scmp.eq.s32.totalorder %s1121_s20, 3 }
   0x9   : > { %s2152_s22 = smov (%p26_p0, %s25_s22), 0  ;;  %s2154_s23 = smov (!%p26_p0, %s28_s23), %s1573_s18 }
   0xa   : > { %s33_s24 = ssub.s32 %s1569_s17, %s2152_s22  ;;  %p1656_p3 = por %p45_p2, %p44_p1 }
   0xb   : > { %p30_p4 = scmp.ge.s32.totalorder %s2154_s23, 2  ;;  %p123_p6 = scmp.ne.s32.totalorder %s1553_s13, %s1549_s12 }
   0xc   : > { %p124_p7 = scmp.eq.s32.totalorder %s1122_s21, 3  ;;  %p1664_p8 = por %p118_p5, %p44_p1 }
   0xd   : > { %s2156_s23 = smov (%p30_p4, %s2154_s23), 0  ;;  %s37_s30 = sadd.s32 1, %s1557_s14 }
   0xe   : > { %p1668_p9 = por %p124_p7, %p123_p6  ;;  %s32_s28 = ssub.s32 %s1573_s18, %s2156_s23 }
   0xf   : > { %s34_s29 = sor.u32 %s33_s24, %s32_s28  ;;  %p1124_p11 = scmp.ge.s32.totalorder %s1577_s19, 4 }
  0x10   : > { %p35_p10 = scmp.eq.s32.totalorder %s34_s29, 0 }
  0x11   : > { %146 = sbr.rel (%p1124_p11) target bundleno = 32 (0x20), region = 24 }
  0x12   : > { %s1676_s4 = scalar_select %p35_p10, %s1557_s14, %s37_s30  }
  0x16   : > { %149 = sbr.rel (!%p1656_p3) target bundleno = 32 (0x20), region = 28  ;;  %s151_s5 = sand.u32 (%p1656_p3), 1, %s1557_s14  }
  0x17   : > { %s1126_s6 = sshll.u32 (%p1656_p3), %s1573_s18, 4  ;;  %s1125_s7 = sshll.u32 (%p1656_p3), %s151_s5, 6 }
  0x18   : > { %s155_s8 = sadd.s32 (%p1656_p3), %s1569_s17, %s1126_s6  ;;  %s153_s21 = scalar_lea.vmem (%p1656_p3), [#allocation2], %s1125_s7 }
  0x19   : > { %s1127_s9 = sshll.u32 (%p1656_p3), %s155_s8, 3 }
  0x1a   : > { %s157_s20 = scalar_lea.vmem (%p1656_p3), %s2137_s0, %s1127_s9 }
  0x1b   : > { %v200_v0 = vld [vmem:[%s157_s20] sm:$0xff]  ;;  %v202_v1 = vld [vmem:[%s157_s20 + $0x10] sm:$0xff] }
  0x1c   : > { %v204_v2 = vld [vmem:[%s157_s20 + $0x20] sm:$0xff]  ;;  %201 = vst [vmem:[%s153_s21] sm:$0xff] %v200_v0  ;;  %203 = vst [vmem:[%s153_s21 + $0x8] sm:$0xff] %v202_v1  ;;  %v206_v3 = vld [vmem:[%s157_s20 + $0x30] sm:$0xff] }
  0x1d   : > { %205 = vst [vmem:[%s153_s21 + $0x10] sm:$0xff] %v204_v2  ;;  %v208_v4 = vld [vmem:[%s157_s20 + $0x40] sm:$0xff]  ;;  %v210_v5 = vld [vmem:[%s157_s20 + $0x50] sm:$0xff]  ;;  %207 = vst [vmem:[%s153_s21 + $0x18] sm:$0xff] %v206_v3 }
  0x1e   : > { %209 = vst [vmem:[%s153_s21 + $0x20] sm:$0xff] %v208_v4  ;;  %211 = vst [vmem:[%s153_s21 + $0x28] sm:$0xff] %v210_v5  ;;  %v212_v6 = vld [vmem:[%s157_s20 + $0x60] sm:$0xff]  ;;  %v214_v7 = vld [vmem:[%s157_s20 + $0x70] sm:$0xff] }
  0x1f   : > { %213 = vst [vmem:[%s153_s21 + $0x30] sm:$0xff] %v212_v6  ;;  %215 = vst [vmem:[%s153_s21 + $0x38] sm:$0xff] %v214_v7 }
  0x20 PF: > { %p1128_p12 = scmp.ge.s32.totalorder %s1577_s19, 1  ;;  %p220_p13 = scmp.lt.s32.totalorder %s1577_s19, 5 }
  0x22   : > { %p221_p0 = pnand %p1128_p12, %p220_p13 }
  0x23   : > { %s227_s24 = sand.u32 (!%p221_p0), 1, %s1553_s13   ;;  %s1580_s7 = smov (!%p221_p0), [#allocation3]  }
  0x24   : > { %224 = sbr.rel (%p221_p0) target bundleno = 610 (0x262), region = 66  ;;  %s1695_s29 = sshll.u32 (!%p221_p0), %s227_s24, 6 }
  0x25   : > { %s229_s30 = scalar_lea.vmem (!%p221_p0), [#allocation2], %s1695_s29  ;;  %s2051_s11 = scalar_lea.vmem (!%p221_p0), [#allocation3], %s1695_s29 }
  0x26   : > { %s1212_s29 = sshll.u32 (!%p221_p0), %s1565_s16, 4  ;;  %s1038_s16 = sshll.u32 (!%p221_p0), %s2051_s11, 4  ;;  %s2072_s16 = int_to_ptr.vmem [resolvable:$true] %s1038_s16 }
  0x27   : > { %s1035_s20 = sadd.s32 (!%p221_p0), %s1561_s15, %s1212_s29  ;;  %s2086_s5 = scalar_lea.sflag (!%p221_p0), [#allocation4], %s227_s24 }
  0x28   : > { %s1213_s21 = sshll.u32 (!%p221_p0), %s1035_s20, 7  ;;  %s1485_s6 = scalar_lea.vmem (!%p221_p0), %s2072_s16, 1024 }
  0x29   : > { %v258_v8 = vld [vmem:[%s2138_s1] sm:$0xff]  ;;  %vm370_vm0 = vcmask 523264   ;;  %v1579_v9 = vmov 0   ;;  %v1699_v10 = vld [vmem:[%s229_s30 + $0x38] sm:$0xff]  ;;  %v1701_v11 = vld [vmem:[%s229_s30 + $0x30] sm:$0xff]  ;;  %s2079_s28 = scalar_lea.hbm %s2140_s3, %s1213_s21  ;;  %p1486_p1 = scmp.ne.s32.totalorder %s2072_s16, %s1485_s6 }
  0x2a   : > { %1280 = vmatprep.mubr.msk.f32.mxu0 %vm370_vm0, %v258_v8  ;;  %1419 = vset.pattern.permute.xlu0 %v1579_v9  ;;  %v1705_v12 = vld [vmem:[%s229_s30 + $0x28] sm:$0xff]  ;;  %v1709_v13 = vld [vmem:[%s229_s30 + $0x20] sm:$0xff]  ;;  %v289_v14 = vld [vmem:[%s2139_s2 + $0x78] sm:$0xff]  ;;  %s1489_s8 = sshll.u32 %s1580_s7, 4  ;;  %s1490_s8 = int_to_ptr.vmem [resolvable:$false] %s1489_s8 }
  0x2b   : > { %1420 = vset.pattern.permute.xlu1 %v1579_v9  ;;  %1264 = vmatprep.subr.mxu0 %v1699_v10  ;;  %v287_v15 = vld [vmem:[%s2139_s2 + $0x68] sm:$0xff]  ;;  %v1719_v16 = vld [vmem:[%s229_s30 + $0x18] sm:$0xff]  ;;  %v288_v17 = vld [vmem:[%s2139_s2 + $0x70] sm:$0xff]  ;;  %p1487_p2 = pnand %p1486_p1, %p1664_p8  ;;  %s1491_s9 = scalar_lea.vmem %s1490_s8, 2048 }
  0x2c   : > { %1265 = vmatpush3.msra.mxu0 %v1699_v10  ;;  %367 = vperm.xlu0 %1419, %v289_v14   ;;  %v1726_v18 = vld [vmem:[%s229_s30 + $0x10] sm:$0xff]  ;;  %v286_v19 = vld [vmem:[%s2139_s2 + $0x60] sm:$0xff]  ;;  %v1733_v20 = vld [vmem:[%s229_s30 + $0x8] sm:$0xff]  ;;  %p1492_p4 = scmp.lt.s32.totalorder %s2072_s16, %s1490_s8  ;;  %p1493_p5 = scmp.lt.s32.totalorder %s1491_s9, %s1485_s6 }
  0x2d   : > { %1266 = vmatprep.subr.mxu0 %v1701_v11  ;;  %357 = vperm.xlu1 %1420, %v287_v15   ;;  %v285_v21 = vld [vmem:[%s2139_s2 + $0x58] sm:$0xff]  ;;  %v1740_v22 = vld [vmem:[%s229_s30] sm:$0xff]  ;;  %v284_v23 = vld [vmem:[%s2139_s2 + $0x50] sm:$0xff]  ;;  %p1488_p3 = pneg %p1487_p2 }
  0x2e   : > { %1267 = vmatpush3.msra.mxu0 %v1701_v11  ;;  %v259_v24 = vld [vmem:[%s2138_s1 + $0x8] sm:$0xff]  ;;  %v260_v25 = vld [vmem:[%s2138_s1 + $0x10] sm:$0xff]  ;;  %v282_v27 = vld [vmem:[%s2139_s2 + $0x40] sm:$0xff]  ;;  %p1494_p6 = por %p1493_p5, %p1492_p4 }
  0x2f   : > { %1268 = vmatprep.subr.mxu0 %v1705_v12  ;;  %v283_v26 = vld [vmem:[%s2139_s2 + $0x48] sm:$0xff]  ;;  %v261_v28 = vld [vmem:[%s2138_s1 + $0x18] sm:$0xff]  ;;  %v262_v29 = vld [vmem:[%s2138_s1 + $0x20] sm:$0xff] }
  0x30   : > { %1269 = vmatpush3.msra.mxu0 %v1705_v12  ;;  %362 = vperm.xlu0 %1419, %v288_v17   ;;  %v281_v30 = vld [vmem:[%s2139_s2 + $0x38] sm:$0xff]  ;;  %v280_v31 = vld [vmem:[%s2139_s2 + $0x30] sm:$0xff]  ;;  %v263_v32 = vld [vmem:[%s2138_s1 + $0x28] sm:$0xff]  ;;  %p1495_p7 = pnand %p1494_p6, %p1488_p3 }
  0x31   : > { %1270 = vmatprep.subr.mxu0 %v1709_v13  ;;  %352 = vperm.xlu1 %1420, %v286_v19   ;;  %v264_v33 = vld [vmem:[%s2138_s1 + $0x30] sm:$0xff]  ;;  %v279_v34 = vld [vmem:[%s2139_s2 + $0x28] sm:$0xff]  ;;  %v278_v35 = vld [vmem:[%s2139_s2 + $0x20] sm:$0xff] }
  0x32   : > { %1271 = vmatpush3.msra.mxu0 %v1709_v13  ;;  %v265_v36 = vld [vmem:[%s2138_s1 + $0x38] sm:$0xff]  ;;  %v266_v37 = vld [vmem:[%s2138_s1 + $0x40] sm:$0xff]  ;;  %v276_v39 = vld [vmem:[%s2139_s2 + $0x10] sm:$0xff] }
  0x33   : > { %1272 = vmatprep.subr.mxu0 %v1719_v16  ;;  %v277_v38 = vld [vmem:[%s2139_s2 + $0x18] sm:$0xff]  ;;  %v267_v40 = vld [vmem:[%s2138_s1 + $0x48] sm:$0xff]  ;;  %v268_v41 = vld [vmem:[%s2138_s1 + $0x50] sm:$0xff] }
  0x34   : > { %1273 = vmatpush3.msra.mxu0 %v1719_v16  ;;  %347 = vperm.xlu0 %1419, %v285_v21   ;;  %v275_v42 = vld [vmem:[%s2139_s2 + $0x8] sm:$0xff]  ;;  %v274_v43 = vld [vmem:[%s2139_s2] sm:$0xff]  ;;  %v269_v44 = vld [vmem:[%s2138_s1 + $0x58] sm:$0xff] }
  0x35   : > { %1274 = vmatprep.subr.mxu0 %v1726_v18  ;;  %342 = vperm.xlu1 %1420, %v284_v23   ;;  %v270_v45 = vld [vmem:[%s2138_s1 + $0x60] sm:$0xff]  ;;  %v1180_v47 = vld [vmem:[%s2139_s2 + $0xc8] sm:$0xff]  ;;  %v272_v49 = vld [vmem:[%s2138_s1 + $0x70] sm:$0xff] }
  0x36   : > { %1275 = vmatpush3.msra.mxu0 %v1726_v18  ;;  %v1179_v46 = vld [vmem:[%s2139_s2 + $0xc0] sm:$0xff]  ;;  %v271_v48 = vld [vmem:[%s2138_s1 + $0x68] sm:$0xff]  ;;  %v1181_v50 = vld [vmem:[%s2139_s2 + $0xd0] sm:$0xff] }
  0x37   : > { %1276 = vmatprep.subr.mxu0 %v1733_v20  ;;  %v1182_v51 = vld [vmem:[%s2139_s2 + $0xd8] sm:$0xff]  ;;  %v1183_v53 = vld [vmem:[%s2139_s2 + $0xe0] sm:$0xff]  ;;  %v1184_v54 = vld [vmem:[%s2139_s2 + $0xe8] sm:$0xff] }
  0x38   : > { %1277 = vmatpush3.msra.mxu0 %v1733_v20  ;;  %337 = vperm.xlu0 %1419, %v283_v26   ;;  %v273_v52 = vld [vmem:[%s2138_s1 + $0x78] sm:$0xff]  ;;  %v1185_v55 = vld [vmem:[%s2139_s2 + $0xf0] sm:$0xff]  ;;  %v1171_v57 = vld [vmem:[%s2139_s2 + $0x80] sm:$0xff] }
  0x39   : > { %1278 = vmatprep.subr.mxu0 %v1740_v22  ;;  %332 = vperm.xlu1 %1420, %v282_v27   ;;  %v1186_v56 = vld [vmem:[%s2139_s2 + $0xf8] sm:$0xff]  ;;  %v1172_v58 = vld [vmem:[%s2139_s2 + $0x88] sm:$0xff]  ;;  %v1173_v59 = vld [vmem:[%s2139_s2 + $0x90] sm:$0xff] }
  0x3a   : > { %1279 = vmatpush3.msra.mxu0 %v1740_v22  ;;  %v1174_v60 = vld [vmem:[%s2139_s2 + $0x98] sm:$0xff]  ;;  %v1175_v61 = vld [vmem:[%s2139_s2 + $0xa0] sm:$0xff]  ;;  %v1176_v62 = vld [vmem:[%s2139_s2 + $0xa8] sm:$0xff] }
  0x3b   : > { %1281 = vmatmul.mubr.msk.f32.vlgmr.msra.gmra.mxu0 %vm370_vm0, %v259_v24  ;;  %v1177_v63 = vld [vmem:[%s2139_s2 + $0xb0] sm:$0xff]  ;;  %v1178_v0 = vld [vmem:[%s2139_s2 + $0xb8] sm:$0xff]  ;;  %v1155_v1 = vld [vmem:[%s2138_s1 + $0x80] sm:$0xff] }
  0x3c   : > { %1283 = vmatprep.mubr.msk.f32.mxu0 %vm370_vm0, %v260_v25  ;;  %327 = vperm.xlu0 %1419, %v281_v30  }
  0x3d   : > { %322 = vperm.xlu1 %1420, %v280_v31   ;;  %1320 = vmatprep.mubr.msk.f32.mxu1 %vm370_vm0, %v1155_v1 }
  0x3f   : > { %1284 = vmatmul.mubr.msk.f32.gmra.mxu0 %vm370_vm0, %v261_v28 }
  0x40   : > { %1286 = vmatprep.mubr.msk.f32.mxu0 %vm370_vm0, %v262_v29  ;;  %317 = vperm.xlu0 %1419, %v279_v34  }
  0x41   : > { %312 = vperm.xlu1 %1420, %v278_v35  }
  0x43   : > { %1287 = vmatmul.mubr.msk.f32.gmra.mxu0 %vm370_vm0, %v263_v32 }
  0x44   : > { %1289 = vmatprep.mubr.msk.f32.mxu0 %vm370_vm0, %v264_v33  ;;  %307 = vperm.xlu0 %1419, %v277_v38  }
  0x45   : > { %302 = vperm.xlu1 %1420, %v276_v39  }
  0x47   : > { %1290 = vmatmul.mubr.msk.f32.gmra.mxu0 %vm370_vm0, %v265_v36 }
  0x48   : > { %1292 = vmatprep.mubr.msk.f32.mxu0 %vm370_vm0, %v266_v37  ;;  %297 = vperm.xlu0 %1419, %v275_v42  }
  0x49   : > { %292 = vperm.xlu1 %1420, %v274_v43  }
  0x4b   : > { %1293 = vmatmul.mubr.msk.f32.gmra.mxu0 %vm370_vm0, %v267_v40 }
  0x4c   : > { %1295 = vmatprep.mubr.msk.f32.mxu0 %vm370_vm0, %v268_v41  ;;  %712 = vperm.xlu0 %1419, %v1179_v46  }
  0x4d   : > { %717 = vperm.xlu1 %1420, %v1180_v47  }
  0x4f   : > { %1296 = vmatmul.mubr.msk.f32.gmra.mxu0 %vm370_vm0, %v269_v44 }
  0x50   : > { %1298 = vmatprep.mubr.msk.f32.mxu0 %vm370_vm0, %v270_v45  ;;  %722 = vperm.xlu0 %1419, %v1181_v50  }
  0x51   : > { %727 = vperm.xlu1 %1420, %v1182_v51  }
  0x53   : > { %1299 = vmatmul.mubr.msk.f32.gmra.mxu0 %vm370_vm0, %v271_v48 }
  0x54   : > { %1301 = vmatprep.mubr.msk.f32.mxu0 %vm370_vm0, %v272_v49  ;;  %732 = vperm.xlu0 %1419, %v1183_v53  }
  0x55   : > { %737 = vperm.xlu1 %1420, %v1184_v54  }
  0x57   : > { %1302 = vmatmul.mubr.msk.f32.gmra.mxu0 %vm370_vm0, %v273_v52 }
  0x58   : > { %742 = vperm.xlu0 %1419, %v1185_v55  }
  0x59   : > { %747 = vperm.xlu1 %1420, %v1186_v56  }
  0x5c   : > { %672 = vperm.xlu0 %1419, %v1171_v57  }
  0x5d   : > { %677 = vperm.xlu1 %1420, %v1172_v58  }
  0x60   : > { %682 = vperm.xlu0 %1419, %v1173_v59  }
  0x61   : > { %687 = vperm.xlu1 %1420, %v1174_v60  }
  0x64   : > { %692 = vperm.xlu0 %1419, %v1175_v61  }
  0x65   : > { %697 = vperm.xlu1 %1420, %v1176_v62  }
  0x68   : > { %702 = vperm.xlu0 %1419, %v1177_v63  }
  0x69   : > { %707 = vperm.xlu1 %1420, %v1178_v0  }
  0xa7   : > { %v368_v7 = vpop.permute.xlu0 %367 }
  0xa8   : > { %v358_v9 = vpop.permute.xlu1 %357 }
  0xab   : > { %v363_v17 = vpop.permute.xlu0 %362 }
  0xac   : > { %v353_v21 = vpop.permute.xlu1 %352 }
  0xaf   : > { %v348_v25 = vpop.permute.xlu0 %347 }
  0xb0   : > { %v343_v27 = vpop.permute.xlu1 %342 }
  0xb3   : > { %v338_v35 = vpop.permute.xlu0 %337 }
  0xb4   : > { %v333_v41 = vpop.permute.xlu1 %332 }
  0xb7   : > { %v328_v59 = vpop.permute.xlu0 %327 }
  0xb8   : > { %v323_v63 = vpop.permute.xlu1 %322 }
  0xfb   : > { %v1891_v2 = vpop.f32.mrf.mxu0 }
  0xfd   : > { %v1893_v3 = vpop.f32.mrf.mxu0 }
  0xff   : > { %v1895_v4 = vpop.f32.mrf.mxu0 }
 0x101   : > { %v1897_v5 = vpop.f32.mrf.mxu0 }
 0x103   : > { %v1899_v6 = vpop.f32.mrf.mxu0 }
 0x105   : > { %v1901_v8 = vpop.f32.mrf.mxu0 }
 0x107   : > { %v1903_v14 = vpop.f32.mrf.mxu0 }
 0x109   : > { %v1905_v15 = vpop.f32.mrf.mxu0 }
 0x10b   : > { %v1294_v19 = vpop.f32.mrf.mxu0 }
 0x10c   : > { %v531_v38 = vadd.f32 %v1294_v19, %v338_v35  ;;  %v313_v19 = vpop.permute.xlu1 %312 }
 0x10d   : > { %v525_v23 = vpop.f32.mrf.mxu0 }
 0x10e   : > { %v526_v44 = vadd.f32 %v525_v23, %v333_v41  ;;  %v1148_v47 = vmul.f32 -1.442695, %v531_v38 }
 0x10f   : > { %v1297_v24 = vpop.f32.mrf.mxu0 }
 0x110   : > { %v541_v28 = vadd.f32 %v1297_v24, %v348_v25  ;;  %v1147_v49 = vmul.f32 -1.442695, %v526_v44  ;;  %v516_v24 = vadd.f32 %v1905_v15, %v323_v63  ;;  %v1169_v63 = vld [vmem:[%s2138_s1 + $0xf0] sm:$0xff] }
 0x111   : > { %v535_v26 = vpop.f32.mrf.mxu0 }
 0x112   : > { %v536_v31 = vadd.f32 %v535_v26, %v343_v27  ;;  %v1150_v36 = vmul.f32 -1.442695, %v541_v28  ;;  %v506_v27 = vadd.f32 %v1901_v8, %v313_v19 }
 0x113   : > { %v1300_v29 = vpop.f32.mrf.mxu0 }
 0x114   : > { %v551_v30 = vadd.f32 %v1300_v29, %v358_v9  ;;  %v1149_v42 = vmul.f32 -1.442695, %v536_v31  ;;  %v318_v9 = vpop.permute.xlu0 %317  ;;  %v616_v35 = vsub.f32 %v506_v27, %v1709_v13 }
 0x115   : > { %v545_v32 = vpop.f32.mrf.mxu0  ;;  %v511_v23 = vadd.f32 %v1899_v6, %v318_v9 }
 0x116   : > { %v1152_v33 = vmul.f32 -1.442695, %v551_v30  ;;  %v546_v34 = vadd.f32 %v545_v32, %v353_v21  ;;  %v521_v21 = vadd.f32 %v1903_v14, %v328_v59  ;;  %v303_v30 = vpop.permute.xlu1 %302  ;;  %v618_v14 = vsub.f32 %v516_v24, %v1701_v11  ;;  %v1165_v59 = vld [vmem:[%s2138_s1 + $0xd0] sm:$0xff] }
 0x117   : > { %v1303_v37 = vpop.f32.mrf.mxu0  ;;  %v496_v15 = vadd.f32 %v1897_v5, %v303_v30 }
 0x118   : > { %1421 = vpow2.f32 %v1152_v33  ;;  %v1151_v39 = vmul.f32 -1.442695, %v546_v34  ;;  %v561_v40 = vadd.f32 %v1303_v37, %v368_v7  ;;  %v308_v25 = vpop.permute.xlu0 %307  ;;  %v619_v28 = vsub.f32 %v521_v21, %v1699_v10 }
 0x119   : > { %v555_v43 = vpop.f32.mrf.mxu0  ;;  %v501_v32 = vadd.f32 %v1895_v4, %v308_v25  ;;  %v617_v33 = vsub.f32 %v511_v23, %v1705_v12  ;;  %v614_v44 = vsub.f32 %v496_v15, %v1726_v18 }
 0x11a   : > { %1423 = vpow2.f32 %v1151_v39  ;;  %v1154_v45 = vmul.f32 -1.442695, %v561_v40  ;;  %v556_v46 = vadd.f32 %v555_v43, %v363_v17  ;;  %v293_v43 = vpop.permute.xlu1 %292 }
 0x11b   : > { %1425 = vpow2.f32 %v1150_v36  ;;  %v615_v4 = vsub.f32 %v501_v32, %v1719_v16 }
 0x11c   : > { %1427 = vpow2.f32 %v1154_v45  ;;  %v1153_v48 = vmul.f32 -1.442695, %v556_v46  ;;  %v298_v39 = vpop.permute.xlu0 %297 }
 0x11d   : > { %1429 = vpow2.f32 %v1149_v42  ;;  %v491_v40 = vadd.f32 %v1891_v2, %v298_v39 }
 0x11e   : > { %1431 = vpow2.f32 %v1153_v48  ;;  %v718_v21 = vpop.permute.xlu1 %717 }
 0x11f   : > { %1433 = vpow2.f32 %v1148_v47 }
 0x120   : > { %1435 = vpow2.f32 %v1147_v49  ;;  %v713_v24 = vpop.permute.xlu0 %712 }
 0x122   : > { %v728_v27 = vpop.permute.xlu1 %727 }
 0x124   : > { %v723_v30 = vpop.permute.xlu0 %722 }
 0x125   : > { %v1422_v50 = vpop.eup %1421 }
 0x126   : > { %v593_v52 = vadd.f32 1.0, %v1422_v50  ;;  %v738_v15 = vpop.permute.xlu1 %737 }
 0x127   : > { %v1424_v51 = vpop.eup %1423 }
 0x128   : > { %v1426_v53 = vpop.eup %1425  ;;  %v592_v55 = vadd.f32 1.0, %v1424_v51  ;;  %1437 = vrcp.f32 %v593_v52 }
 0x129   : > { %v1428_v54 = vpop.eup %1427  ;;  %v591_v60 = vadd.f32 1.0, %v1426_v53  ;;  %v1159_v53 = vld [vmem:[%s2138_s1 + $0xa0] sm:$0xff] }
 0x12a   : > { %v1430_v56 = vpop.eup %1429  ;;  %v595_v57 = vadd.f32 1.0, %v1428_v54  ;;  %v1160_v54 = vld [vmem:[%s2138_s1 + $0xa8] sm:$0xff] }
 0x12b   : > { %v1432_v58 = vpop.eup %1431  ;;  %v590_v0 = vadd.f32 1.0, %v1430_v56  ;;  %v1162_v56 = vld [vmem:[%s2138_s1 + $0xb8] sm:$0xff] }
 0x12c   : > { %1439 = vrcp.f32 %v595_v57  ;;  %v594_v61 = vadd.f32 1.0, %v1432_v58  ;;  %v1434_v62 = vpop.eup %1433  ;;  %v1163_v57 = vld [vmem:[%s2138_s1 + $0xc0] sm:$0xff]  ;;  %v1164_v58 = vld [vmem:[%s2138_s1 + $0xc8] sm:$0xff] }
 0x12d   : > { %1441 = vrcp.f32 %v592_v55  ;;  %v1436_v1 = vpop.eup %1435  ;;  %v589_v7 = vadd.f32 1.0, %v1434_v62  ;;  %v1161_v55 = vld [vmem:[%s2138_s1 + $0xb0] sm:$0xff]  ;;  %v1168_v62 = vld [vmem:[%s2138_s1 + $0xe8] sm:$0xff] }
 0x12e   : > { %1443 = vrcp.f32 %v594_v61  ;;  %v588_v17 = vadd.f32 1.0, %v1436_v1  ;;  %v1167_v61 = vld [vmem:[%s2138_s1 + $0xe0] sm:$0xff] }
 0x12f   : > { %1445 = vrcp.f32 %v591_v60  ;;  %v1166_v60 = vld [vmem:[%s2138_s1 + $0xd8] sm:$0xff] }
 0x130   : > { %1447 = vrcp.f32 %v590_v0  ;;  %v1170_v0 = vld [vmem:[%s2138_s1 + $0xf8] sm:$0xff] }
 0x131   : > { %1449 = vrcp.f32 %v589_v7 }
 0x132   : > { %1451 = vrcp.f32 %v588_v17 }
 0x135   : > { %v1438_v26 = vpop.eup %1437 }
 0x136   : > { %v625_v37 = vmul.f32 %v1438_v26, %v617_v33 }
 0x138   : > { %v1931_v2 = vadd.f32 %v625_v37, %v1705_v12 }
 0x139   : > { %v1440_v29 = vpop.eup %1439 }
 0x13a   : > { %v1442_v31 = vpop.eup %1441  ;;  %v627_v34 = vmul.f32 %v1440_v29, %v619_v28 }
 0x13b   : > { %v1444_v6 = vpop.eup %1443  ;;  %v624_v42 = vmul.f32 %v1442_v31, %v616_v35 }
 0x13c   : > { %v1918_v36 = vadd.f32 %v627_v34, %v1699_v10  ;;  %v626_v8 = vmul.f32 %v1444_v6, %v618_v14  ;;  %v1446_v38 = vpop.eup %1445  ;;  %v486_v10 = vadd.f32 %v1893_v3, %v293_v43 }
 0x13d   : > { %v1448_v5 = vpop.eup %1447  ;;  %v623_v45 = vmul.f32 %v1446_v38, %v615_v4  ;;  %v1937_v47 = vadd.f32 %v624_v42, %v1709_v13  ;;  %v733_v38 = vpop.permute.xlu0 %732 }
 0x13e   : > { %1304 = vmatprep.subr.mxu1 %v1918_v36  ;;  %v1924_v41 = vadd.f32 %v626_v8, %v1701_v11  ;;  %v1450_v46 = vpop.eup %1449  ;;  %v613_v11 = vsub.f32 %v491_v40, %v1733_v20  ;;  %v622_v48 = vmul.f32 %v1448_v5, %v614_v44  ;;  %v612_v49 = vsub.f32 %v486_v10, %v1740_v22  ;;  %v748_v10 = vpop.permute.xlu1 %747 }
 0x13f   : > { %1305 = vmatpush3.msra.mxu1 %v1918_v36  ;;  %v1452_v3 = vpop.eup %1451  ;;  %v1943_v12 = vadd.f32 %v623_v45, %v1719_v16 }
 0x140   : > { %1306 = vmatprep.subr.mxu1 %v1924_v41  ;;  %v621_v50 = vmul.f32 %v1450_v46, %v613_v11  ;;  %v1948_v51 = vadd.f32 %v622_v48, %v1726_v18  ;;  %v620_v13 = vmul.f32 %v1452_v3, %v612_v49  ;;  %v1156_v18 = vld [vmem:[%s2138_s1 + $0x88] sm:$0xff] }
 0x141   : > { %1307 = vmatpush3.msra.mxu1 %v1924_v41  ;;  %v743_v11 = vpop.permute.xlu0 %742 }
 0x142   : > { %1308 = vmatprep.subr.mxu1 %v1931_v2  ;;  %v1953_v52 = vadd.f32 %v621_v50, %v1733_v20  ;;  %v1958_v16 = vadd.f32 %v620_v13, %v1740_v22  ;;  %v1157_v20 = vld [vmem:[%s2138_s1 + $0x90] sm:$0xff]  ;;  %v1158_v22 = vld [vmem:[%s2138_s1 + $0x98] sm:$0xff] }
 0x143   : > { %1309 = vmatpush3.msra.mxu1 %v1931_v2 }
 0x144   : > { %1310 = vmatprep.subr.mxu1 %v1937_v47 }
 0x145   : > { %1311 = vmatpush3.msra.mxu1 %v1937_v47 }
 0x146   : > { %1312 = vmatprep.subr.mxu1 %v1943_v12 }
 0x147   : > { %1313 = vmatpush3.msra.mxu1 %v1943_v12 }
 0x148   : > { %1314 = vmatprep.subr.mxu1 %v1948_v51 }
 0x149   : > { %1315 = vmatpush3.msra.mxu1 %v1948_v51 }
 0x14a   : > { %1316 = vmatprep.subr.mxu1 %v1953_v52 }
 0x14b   : > { %1317 = vmatpush3.msra.mxu1 %v1953_v52 }
 0x14c   : > { %1318 = vmatprep.subr.mxu1 %v1958_v16 }
 0x14d   : > { %1319 = vmatpush3.msra.mxu1 %v1958_v16 }
 0x14e   : > { %1321 = vmatmul.mubr.msk.f32.vlgmr.msra.gmra.mxu1 %vm370_vm0, %v1156_v18 }
 0x14f   : > { %1323 = vmatprep.mubr.msk.f32.mxu1 %vm370_vm0, %v1157_v20 }
 0x152   : > { %1324 = vmatmul.mubr.msk.f32.gmra.mxu1 %vm370_vm0, %v1158_v22 }
 0x153   : > { %1326 = vmatprep.mubr.msk.f32.mxu1 %vm370_vm0, %v1159_v53 }
 0x156   : > { %1327 = vmatmul.mubr.msk.f32.gmra.mxu1 %vm370_vm0, %v1160_v54  ;;  %v678_v54 = vpop.permute.xlu1 %677 }
 0x157   : > { %1329 = vmatprep.mubr.msk.f32.mxu1 %vm370_vm0, %v1161_v55 }
 0x15a   : > { %1330 = vmatmul.mubr.msk.f32.gmra.mxu1 %vm370_vm0, %v1162_v56 }
 0x15b   : > { %1332 = vmatprep.mubr.msk.f32.mxu1 %vm370_vm0, %v1163_v57  ;;  %v673_v57 = vpop.permute.xlu0 %672 }
 0x15e   : > { %1333 = vmatmul.mubr.msk.f32.gmra.mxu1 %vm370_vm0, %v1164_v58 }
 0x15f   : > { %1335 = vmatprep.mubr.msk.f32.mxu1 %vm370_vm0, %v1165_v59 }
 0x162   : > { %1336 = vmatmul.mubr.msk.f32.gmra.mxu1 %vm370_vm0, %v1166_v60 }
 0x163   : > { %1338 = vmatprep.mubr.msk.f32.mxu1 %vm370_vm0, %v1167_v61 }
 0x166   : > { %1339 = vmatmul.mubr.msk.f32.gmra.mxu1 %vm370_vm0, %v1168_v62  ;;  %v688_v62 = vpop.permute.xlu1 %687 }
 0x167   : > { %1341 = vmatprep.mubr.msk.f32.mxu1 %vm370_vm0, %v1169_v63 }
 0x16a   : > { %1342 = vmatmul.mubr.msk.f32.gmra.mxu1 %vm370_vm0, %v1170_v0 }
 0x20e   : > { %v2023_v1 = vpop.f32.mrf.mxu1 }
 0x20f   : > { %v870_v63 = vadd.f32 %v2023_v1, %v678_v54 }
 0x210   : > { %v2025_v7 = vpop.f32.mrf.mxu1 }
 0x212   : > { %v2027_v9 = vpop.f32.mrf.mxu1 }
 0x214   : > { %v2029_v17 = vpop.f32.mrf.mxu1 }
 0x216   : > { %v2031_v19 = vpop.f32.mrf.mxu1 }
 0x218   : > { %v2033_v23 = vpop.f32.mrf.mxu1 }
 0x21a   : > { %v2035_v25 = vpop.f32.mrf.mxu1 }
 0x21c   : > { %v2037_v26 = vpop.f32.mrf.mxu1 }
 0x21e   : > { %v1334_v28 = vpop.f32.mrf.mxu1 }
 0x21f   : > { %v910_v29 = vadd.f32 %v1334_v28, %v718_v21 }
 0x220   : > { %v904_v31 = vpop.f32.mrf.mxu1 }
 0x221   : > { %v1204_v32 = vmul.f32 -1.442695, %v910_v29  ;;  %v905_v33 = vadd.f32 %v904_v31, %v713_v24  ;;  %v683_v24 = vpop.permute.xlu0 %682  ;;  %v880_v31 = vadd.f32 %v2027_v9, %v688_v62 }
 0x222   : > { %v1337_v14 = vpop.f32.mrf.mxu1 }
 0x223   : > { %1453 = vpow2.f32 %v1204_v32  ;;  %v1203_v34 = vmul.f32 -1.442695, %v905_v33  ;;  %v920_v6 = vadd.f32 %v1337_v14, %v728_v27  ;;  %v865_v27 = vadd.f32 %v2025_v7, %v673_v57  ;;  %v698_v14 = vpop.permute.xlu1 %697 }
 0x224   : > { %v914_v35 = vpop.f32.mrf.mxu1 }
 0x225   : > { %1455 = vpow2.f32 %v1203_v34  ;;  %v1206_v8 = vmul.f32 -1.442695, %v920_v6  ;;  %v915_v37 = vadd.f32 %v914_v35, %v723_v30  ;;  %v992_v30 = vsub.f32 %v870_v63, %v1953_v52  ;;  %v693_v7 = vpop.permute.xlu0 %692 }
 0x226   : > { %v1340_v39 = vpop.f32.mrf.mxu1  ;;  %v991_v1 = vsub.f32 %v865_v27, %v1958_v16  ;;  %v875_v34 = vadd.f32 %v2029_v17, %v683_v24  ;;  %v994_v35 = vsub.f32 %v880_v31, %v1943_v12 }
 0x227   : > { %1457 = vpow2.f32 %v1206_v8  ;;  %v1205_v40 = vmul.f32 -1.442695, %v915_v37  ;;  %v930_v4 = vadd.f32 %v1340_v39, %v738_v15  ;;  %v890_v8 = vadd.f32 %v2031_v19, %v698_v14  ;;  %v708_v19 = vpop.permute.xlu1 %707 }
 0x228   : > { %v924_v42 = vpop.f32.mrf.mxu1  ;;  %v993_v39 = vsub.f32 %v875_v34, %v1948_v51 }
 0x229   : > { %1459 = vpow2.f32 %v1205_v40  ;;  %v1208_v5 = vmul.f32 -1.442695, %v930_v4  ;;  %v925_v43 = vadd.f32 %v924_v42, %v733_v38  ;;  %v885_v40 = vadd.f32 %v2033_v23, %v693_v7 }
 0x22a   : > { %v1343_v44 = vpop.f32.mrf.mxu1 }
 0x22b   : > { %1461 = vpow2.f32 %v1208_v5  ;;  %v1207_v45 = vmul.f32 -1.442695, %v925_v43  ;;  %v940_v46 = vadd.f32 %v1343_v44, %v748_v10  ;;  %v900_v5 = vadd.f32 %v2035_v25, %v708_v19  ;;  %v703_v44 = vpop.permute.xlu0 %702 }
 0x22c   : > { %v934_v48 = vpop.f32.mrf.mxu1 }
 0x22d   : > { %1463 = vpow2.f32 %v1207_v45  ;;  %v1210_v3 = vmul.f32 -1.442695, %v940_v46  ;;  %v935_v49 = vadd.f32 %v934_v48, %v743_v11  ;;  %v895_v45 = vadd.f32 %v2037_v26, %v703_v44 }
 0x22e   : > { %v998_v25 = vsub.f32 %v900_v5, %v1918_v36 }
 0x22f   : > { %1465 = vpow2.f32 %v1210_v3  ;;  %v1209_v50 = vmul.f32 -1.442695, %v935_v49  ;;  %v997_v26 = vsub.f32 %v895_v45, %v1924_v41 }
 0x230   : > { %v1454_v13 = vpop.eup %1453 }
 0x231   : > { %v968_v18 = vadd.f32 1.0, %v1454_v13  ;;  %1467 = vpow2.f32 %v1209_v50 }
 0x232   : > { %v1456_v20 = vpop.eup %1455 }
 0x233   : > { %1469 = vrcp.f32 %v968_v18  ;;  %v967_v22 = vadd.f32 1.0, %v1456_v20 }
 0x234   : > { %v1458_v53 = vpop.eup %1457 }
 0x235   : > { %1471 = vrcp.f32 %v967_v22  ;;  %v970_v55 = vadd.f32 1.0, %v1458_v53 }
 0x236   : > { %v1460_v56 = vpop.eup %1459 }
 0x237   : > { %1473 = vrcp.f32 %v970_v55  ;;  %v969_v58 = vadd.f32 1.0, %v1460_v56 }
 0x238   : > { %v1462_v59 = vpop.eup %1461 }
 0x239   : > { %1475 = vrcp.f32 %v969_v58  ;;  %v972_v60 = vadd.f32 1.0, %v1462_v59 }
 0x23a   : > { %v1464_v61 = vpop.eup %1463 }
 0x23b   : > { %1477 = vrcp.f32 %v972_v60  ;;  %v971_v0 = vadd.f32 1.0, %v1464_v61 }
 0x23c   : > { %v1466_v21 = vpop.eup %1465 }
 0x23d   : > { %1479 = vrcp.f32 %v971_v0  ;;  %v974_v28 = vadd.f32 1.0, %v1466_v21 }
 0x23e   : > { %v1468_v29 = vpop.eup %1467 }
 0x23f   : > { %1481 = vrcp.f32 %v974_v28  ;;  %v973_v32 = vadd.f32 1.0, %v1468_v29 }
 0x240   : > { %v1470_v33 = vpop.eup %1469 }
 0x241   : > { %v1000_v6 = vmul.f32 %v1470_v33, %v992_v30  ;;  %1483 = vrcp.f32 %v973_v32 }
 0x242   : > { %v1472_v15 = vpop.eup %1471 }
 0x243   : > { %v1008_v37 = vadd.f32 %v1000_v6, %v1953_v52  ;;  %v999_v9 = vmul.f32 %v1472_v15, %v991_v1  ;;  %v996_v52 = vsub.f32 %v890_v8, %v1931_v2 }
 0x244   : > { %v1474_v38 = vpop.eup %1473 }
 0x245   : > { %1016 = vst [vmem:[%s2051_s11 + $0x8] sm:$0xff] %v1008_v37  ;;  %v1007_v17 = vadd.f32 %v999_v9, %v1958_v16  ;;  %v1002_v4 = vmul.f32 %v1474_v38, %v994_v35  ;;  %v995_v16 = vsub.f32 %v885_v40, %v1937_v47 }
 0x246   : > { %v1476_v42 = vpop.eup %1475 }
 0x247   : > { %1015 = vst [vmem:[%s2051_s11] sm:$0xff] %v1007_v17  ;;  %v1010_v23 = vadd.f32 %v1002_v4, %v1943_v12  ;;  %v1001_v43 = vmul.f32 %v1476_v42, %v993_v39 }
 0x248   : > { %v1478_v10 = vpop.eup %1477 }
 0x249   : > { %1018 = vst [vmem:[%s2051_s11 + $0x18] sm:$0xff] %v1010_v23  ;;  %v1009_v46 = vadd.f32 %v1001_v43, %v1948_v51  ;;  %v1004_v11 = vmul.f32 %v1478_v10, %v996_v52 }
 0x24a   : > { %v1480_v48 = vpop.eup %1479 }
 0x24b   : > { %1017 = vst [vmem:[%s2051_s11 + $0x10] sm:$0xff] %v1009_v46  ;;  %v1012_v12 = vadd.f32 %v1004_v11, %v1931_v2  ;;  %v1003_v3 = vmul.f32 %v1480_v48, %v995_v16 }
 0x24c   : > { %v1482_v49 = vpop.eup %1481 }
 0x24d   : > { %1020 = vst [vmem:[%s2051_s11 + $0x28] sm:$0xff] %v1012_v12  ;;  %v1011_v51 = vadd.f32 %v1003_v3, %v1937_v47  ;;  %v1006_v50 = vmul.f32 %v1482_v49, %v998_v25 }
 0x24e   : > { %v1484_v13 = vpop.eup %1483 }
 0x24f   : > { %1019 = vst [vmem:[%s2051_s11 + $0x20] sm:$0xff] %v1011_v51  ;;  %v1014_v2 = vadd.f32 %v1006_v50, %v1918_v36  ;;  %v1005_v18 = vmul.f32 %v1484_v13, %v997_v26 }
 0x251   : > { %1022 = vst [vmem:[%s2051_s11 + $0x38] sm:$0xff] %v1014_v2  ;;  %v1013_v47 = vadd.f32 %v1005_v18, %v1924_v41 }
 0x253   : > { %1021 = vst [vmem:[%s2051_s11 + $0x30] sm:$0xff] %v1013_v47 }
 0x254   : > { %1498 = shalt.err (!%p1495_p7)
}
 0x255   : > { %s1499_s24 = scalar_lea.hbm %s2079_s28, 1024  ;;  %s1503_s11 = scalar_lea.hbm %s2140_s3, 4096 }
 0x256   : > { %p1500_p10 = scmp.ne.s32.totalorder %s2079_s28, %s1499_s24  ;;  %p1504_p13 = scmp.lt.s32.totalorder %s2079_s28, %s2140_s3 }
 0x257   : > { %p1505_p0 = scmp.lt.s32.totalorder %s1503_s11, %s1499_s24 }
 0x258   : > { %p1501_p11 = pnand %p1500_p10, %p1664_p8 }
 0x259   : > { %p1506_p1 = por %p1505_p0, %p1504_p13 }
 0x25a   : > { %p1502_p12 = pneg %p1501_p11 }
 0x25c   : > { %p1507_p2 = pnand %p1506_p1, %p1502_p12 }
 0x25e   : > { %1510 = shalt.err (!%p1507_p2)
}
 0x25f   : > { %s1581_s21 = smov 128   ;;  %s1582_s15 = smov 256  }
 0x260   : > { %s1583_s25 = smov 8  }
 0x261   : > { %1344 = dma.vmem_to_hbm [thread:$0]  (%p1664_p8), %s2072_s16, 1024, %s2079_s28, %s2086_s5, %s1581_s21, %s1582_s15, %s1583_s25  }
 0x262 PF: > { %p1350_p3 = scmp.ge.s32.totalorder %s1577_s19, 2  ;;  %s1053_s6 = sand.u32 1, %s1549_s12  }
 0x263   : > { %s1054_s7 = scalar_lea.sflag [#allocation4], %s1053_s6 }
 0x264   : > { %p1347_p4 = pnand %p1350_p3, %p1668_p9 }
 0x266   : > { %p1348_p5 = pneg %p1347_p4 }
 0x268   : > { %1544 = dma.done.wait (%p1348_p5), %s1054_s7, 1024  }
 0x269   : > { %1546 = vsyncadd (%p1348_p5), %s1054_s7, 4294966272  ;;  %s16_s19 = sadd.s32 1, %s1577_s19   ;;  %s2144_s12 = smov %s1553_s13 }
 0x26a   : > { %p13_p6 = scmp.ge.s32.totalorder %s16_s19, 6   ;;  %s2145_s13 = smov %s1557_s14 }
 0x26b   : > { %s2146_s14 = smov %s1676_s4  ;;  %s2147_s15 = smov %s1569_s17 }
 0x26c   : > { %s2148_s16 = smov %s1573_s18  ;;  %s2149_s17 = smov %s2152_s22 }
 0x26d   : > { %s2150_s18 = smov %s2156_s23  ;;  %15 = sbr.rel (!%p13_p6) target bundleno = 5 (0x5), region = 112 }
 0x272   :  { %1059 = vsyncpa [#allocation4], 1 }
 0x273   :  { %1061 = vsyncpa [#allocation4 + $0x1], 1 }

</bundles_post_ra>
